<compile_context>
chip_gen: v5e
topology: v5e:2x2
jax: 0.10.0
libtpu: 0.0.40
codegen_flags: <defaults>
</compile_context>

<pallas_src>
import jax
import jax.numpy as jnp
from jax.experimental import pallas as pl
from jax.experimental.pallas import tpu as pltpu


# --------------------------------------------------------------------------
# Kernel: one batch element per grid step.
# --------------------------------------------------------------------------
def _down_half_kernel(alpha_ref, xp_ref, sc_ref,
                      t1_ref, b1_ref, p1_ref,
                      t2_ref, b2_ref, p2_ref,
                      wfc_ref, bfc_ref,
                      o_ref, pad_ref):
    f32 = jnp.float32
    eps = 1e-5
    hh, wcout = o_ref.shape          # (H/2, (W/2)*out_ch)
    alpha = alpha_ref[0, 0]

    # ---- conv1: 3 row-shifted Toeplitz matmuls (+ bias) ----------------------
    y1 = jnp.dot(xp_ref[0:hh, :], t1_ref[0], preferred_element_type=f32)
    y1 = y1 + jnp.dot(xp_ref[1:hh + 1, :], t1_ref[1], preferred_element_type=f32)
    y1 = y1 + jnp.dot(xp_ref[2:hh + 2, :], t1_ref[2], preferred_element_type=f32)
    y1 = y1 + b1_ref[...]

    # ---- InstanceNorm (biased var, eps=1e-5) + ReLU ---------------------------
    s = jnp.sum(y1, axis=0, keepdims=True)
    s2 = jnp.sum(y1 * y1, axis=0, keepdims=True)
    mu = jnp.dot(s, p1_ref[...], preferred_element_type=f32)     # per-chan mean, broadcast
    ex2 = jnp.dot(s2, p1_ref[...], preferred_element_type=f32)   # per-chan E[x^2], broadcast
    var = ex2 - mu * mu
    h1 = (y1 - mu) * jax.lax.rsqrt(var + eps)
    h1 = jnp.maximum(h1, 0.0)

    # ---- H-padded scratch for conv2 (W-padding is baked into T2) -------------
    pad_ref[...] = jnp.zeros_like(pad_ref)
    pad_ref[1:hh + 1, :] = h1

    # ---- conv2 ----------------------------------------------------------------
    y2 = jnp.dot(pad_ref[0:hh, :], t2_ref[0], preferred_element_type=f32)
    y2 = y2 + jnp.dot(pad_ref[1:hh + 1, :], t2_ref[1], preferred_element_type=f32)
    y2 = y2 + jnp.dot(pad_ref[2:hh + 2, :], t2_ref[2], preferred_element_type=f32)
    y2 = y2 + b2_ref[...]

    # ---- InstanceNorm ----------------------------------------------------------
    s = jnp.sum(y2, axis=0, keepdims=True)
    s2 = jnp.sum(y2 * y2, axis=0, keepdims=True)
    mu = jnp.dot(s, p2_ref[...], preferred_element_type=f32)
    ex2 = jnp.dot(s2, p2_ref[...], preferred_element_type=f32)
    var = ex2 - mu * mu
    xin = (y2 - mu) * jax.lax.rsqrt(var + eps)

    # ---- AdaIN code (fused, pre-widened fc) + alpha blend + LeakyReLU ---------
    fc = jnp.dot(sc_ref[...], wfc_ref[...], preferred_element_type=f32) + bfc_ref[...]
    mean_y = fc[:, :wcout]
    var_y = jnp.maximum(fc[:, wcout:], 0.0)          # ReLU(fc_var)

    scale = var_y * alpha + (1.0 - alpha)            # folds "*alpha + (1-alpha)"
    shift = mean_y * alpha
    x_out = xin * scale + shift
    o_ref[...] = jnp.where(x_out >= 0.0, x_out, 0.01 * x_out)   # LeakyReLU(0.01)


# --------------------------------------------------------------------------
# Trace-time weight folding helpers (plain JAX, run once in the wrapper).
# --------------------------------------------------------------------------
def _toeplitz(w_hwio, w_out):
    """Fold a 3x3 conv weight (HWIO) into 3 row-Toeplitz matrices.

    Returns (3, w_out*Cin, w_out*Cout); zero-padding along W is baked in by
    skipping out-of-range taps.
    """
    kh, kw, cin, cout = w_hwio.shape
    ts = []
    for ky in range(kh):
        t = jnp.zeros((w_out * cin, w_out * cout), w_hwio.dtype)
        for kx in range(kw):
            for j in range(w_out):
                jj = j + kx - 1                      # source column (padding=1)
                if 0 <= jj < w_out:
                    t = t.at[jj * cin:(jj + 1) * cin,
                             j * cout:(j + 1) * cout].set(w_hwio[ky, kx])
        ts.append(t)
    return jnp.stack(ts, axis=0)


def _pool_matrix(w_out, ch, h_out, dtype):
    """P such that (row-sum of y) @ P == per-channel spatial mean, broadcast
    back to the lane-dense (1, w_out*ch) layout."""
    return jnp.tile(jnp.eye(ch, dtype=dtype), (w_out, w_out)) / float(h_out * w_out)


# --------------------------------------------------------------------------
# Wrapper: layout plumbing + weight folding + pallas_call.
# --------------------------------------------------------------------------
def down_half_polyphase_forward(params, x, shared_code, alpha):
    N, C, H, W = x.shape
    hh, wh = H // 2, W // 2
    c4 = 4 * C
    c_mid = params["w1"].shape[-1]
    c_out = params["w2"].shape[-1]

    # --- subpixel pooling (same slice order as the torch code) ---------------
    x1 = x[:, :, ::2, ::2]
    x2 = x[:, :, ::2, 1::2]
    x3 = x[:, :, 1::2, ::2]
    x4 = x[:, :, 1::2, 1::2]
    xp = jnp.concatenate([x1, x2, x3, x4], axis=1)          # (N, 4C, hh, wh)

    # NCHW -> NHWC, zero-pad H only, flatten (W, C) into a lane-dense dim.
    xh = jnp.transpose(xp, (0, 2, 3, 1))                    # (N, hh, wh, 4C)
    xh = jnp.pad(xh, ((0, 0), (1, 1), (0, 0), (0, 0)))
    x_flat = xh.reshape(N, hh + 2, wh * c4).astype(jnp.float32)

    # --- fold conv weights / biases / instance-norm pooling matrices ---------
    t1 = _toeplitz(params["w1"].astype(jnp.float32), wh)    # (3, wh*c4,   wh*c_mid)
    t2 = _toeplitz(params["w2"].astype(jnp.float32), wh)    # (3, wh*c_mid, wh*c_out)
    b1w = jnp.tile(params["b1"].astype(jnp.float32), wh)[None, :]
    b2w = jnp.tile(params["b2"].astype(jnp.float32), wh)[None, :]
    p1 = _pool_matrix(wh, c_mid, hh, jnp.float32)
    p2 = _pool_matrix(wh, c_out, hh, jnp.float32)

    # --- AdaIN fc weights: fuse mean|var and pre-widen to the lane layout ----
    wfc = jnp.concatenate(
        [jnp.tile(params["w_mean"].astype(jnp.float32), (1, wh)),
         jnp.tile(params["w_var"].astype(jnp.float32), (1, wh))], axis=1)
    bfc = jnp.concatenate(
        [jnp.tile(params["b_mean"].astype(jnp.float32), wh),
         jnp.tile(params["b_var"].astype(jnp.float32), wh)])[None, :]

    sc = shared_code.reshape(N, 1, 64).astype(jnp.float32)
    alpha_arr = jnp.full((1, 1), alpha, jnp.float32)

    out_flat = pl.pallas_call(
        _down_half_kernel,
        out_shape=jax.ShapeDtypeStruct((N, hh, wh * c_out), jnp.float32),
        grid=(N,),
        in_specs=[
            pl.BlockSpec(memory_space=pltpu.MemorySpace.SMEM),                    # alpha
            pl.BlockSpec((None, hh + 2, wh * c4), lambda n: (n, 0, 0)),           # pooled x
            pl.BlockSpec((None, 1, 64), lambda n: (n, 0, 0)),                     # shared_code
            pl.BlockSpec((3, wh * c4, wh * c_mid), lambda n: (0, 0, 0)),          # T1
            pl.BlockSpec((1, wh * c_mid), lambda n: (0, 0)),                      # b1 (wide)
            pl.BlockSpec((wh * c_mid, wh * c_mid), lambda n: (0, 0)),             # P1
            pl.BlockSpec((3, wh * c_mid, wh * c_out), lambda n: (0, 0, 0)),       # T2
            pl.BlockSpec((1, wh * c_out), lambda n: (0, 0)),                      # b2 (wide)
            pl.BlockSpec((wh * c_out, wh * c_out), lambda n: (0, 0)),             # P2
            pl.BlockSpec((64, 2 * wh * c_out), lambda n: (0, 0)),                 # fc weights
            pl.BlockSpec((1, 2 * wh * c_out), lambda n: (0, 0)),                  # fc bias
        ],
        out_specs=pl.BlockSpec((None, hh, wh * c_out), lambda n: (n, 0, 0)),
        scratch_shapes=[pltpu.VMEM((hh + 2, wh * c_mid), jnp.float32)],
        compiler_params=pltpu.CompilerParams(dimension_semantics=("parallel",)),
    )(alpha_arr, x_flat, sc, t1, b1w, p1, t2, b2w, p2, wfc, bfc)

    # lane-dense (N, hh, wh*c_out) -> NCHW (N, c_out, hh, wh)
    out = out_flat.reshape(N, hh, wh, c_out)
    return jnp.transpose(out, (0, 3, 1, 2))


# --------------------------------------------------------------------------
# Parameter construction + pure-JAX reference for validation.
# --------------------------------------------------------------------------
def make_params(key, pooled_in_ch, out_ch):
    # NOTE: the torch module's `in_ch` must equal the post-pooling channel
    # count (4 * raw channels) for its forward() to type-check; same here.
    c_mid = out_ch // 2
    ks = jax.random.split(key, 8)

    def u(k, shape, fan_in):
        b = 1.0 / (fan_in ** 0.5)
        return jax.random.uniform(k, shape, jnp.float32, minval=-b, maxval=b)

    return {
        "w1": u(ks[0], (3, 3, pooled_in_ch, c_mid), 9 * pooled_in_ch),  # HWIO
        "b1": u(ks[1], (c_mid,), 9 * pooled_in_ch),
        "w2": u(ks[2], (3, 3, c_mid, out_ch), 9 * c_mid),
        "b2": u(ks[3], (out_ch,), 9 * c_mid),
        "w_mean": u(ks[4], (64, out_ch), 64),
        "b_mean": u(ks[5], (out_ch,), 64),
        "w_var": u(ks[6], (64, out_ch), 64),
        "b_var": u(ks[7], (out_ch,), 64),
    }


def _reference_forward(params, x, shared_code, alpha):
    eps = 1e-5
    x1 = x[:, :, ::2, ::2]
    x2 = x[:, :, ::2, 1::2]
    x3 = x[:, :, 1::2, ::2]
    x4 = x[:, :, 1::2, 1::2]
    xp = jnp.concatenate([x1, x2, x3, x4], axis=1)

    def conv(z_nchw, w_hwio, b):
        z = jnp.transpose(z_nchw, (0, 2, 3, 1))
        y = jax.lax.conv_general_dilated(
            z, w_hwio, window_strides=(1, 1), padding=((1, 1), (1, 1)),
            dimension_numbers=("NHWC", "HWIO", "NHWC"))
        return jnp.transpose(y + b, (0, 3, 1, 2))

    def inst_norm(y):
        mu = jnp.mean(y, axis=(2, 3), keepdims=True)
        var = jnp.mean((y - mu) ** 2, axis=(2, 3), keepdims=True)
        return (y - mu) * jax.lax.rsqrt(var + eps)

    h = jnp.maximum(inst_norm(conv(xp, params["w1"], params["b1"])), 0.0)
    y = inst_norm(conv(h, params["w2"], params["b2"]))

    fc_mean = shared_code @ params["w_mean"] + params["b_mean"]
    fc_var = jnp.maximum(shared_code @ params["w_var"] + params["b_var"], 0.0)
    mean_y = fc_mean[:, :, None, None]
    sigma_y = fc_var[:, :, None, None]
    out = sigma_y * y + mean_y
    out = out * alpha + y * (1.0 - alpha)
    return jnp.where(out >= 0.0, out, 0.01 * out)


if __name__ == "__main__":
    key = jax.random.PRNGKey(0)
    kx, ksc, kp = jax.random.split(key, 3)

    N, C, H, W = 2, 4, 16, 16          # raw input (N, C, H, W)
    in_ch, out_ch = 4 * C, 32          # module config: conv1 sees 4*C channels

    x = jax.random.normal(kx, (N, C, H, W), jnp.float32)
    shared_code = jax.random.normal(ksc, (N, 64), jnp.float32)
    alpha = 0.7
    params = make_params(kp, in_ch, out_ch)

    fwd = jax.jit(down_half_polyphase_forward)
    out = jax.block_until_ready(fwd(params, x, shared_code, alpha))
    assert out.shape == (N, out_ch, H // 2, W // 2), out.shape

    ref = _reference_forward(params, x, shared_code, alpha)
    max_err = float(jnp.max(jnp.abs(out - ref)))
    assert jnp.allclose(out, ref, atol=2e-3, rtol=2e-3), f"mismatch, max|d|={max_err}"

    print("KERNEL_OK")
</pallas_src>

<mosaic_0001>
module attributes {stable_mosaic.version = 11 : i64} {
  func.func @_down_half_kernel(%arg0: i32, %arg1: memref<1x1xf32, #tpu.memory_space<smem>>, %arg2: memref<1x10x128xf32, #tpu.memory_space<vmem>>, %arg3: memref<1x1x64xf32, #tpu.memory_space<vmem>>, %arg4: memref<3x128x128xf32, #tpu.memory_space<vmem>>, %arg5: memref<1x128xf32, #tpu.memory_space<vmem>>, %arg6: memref<128x128xf32, #tpu.memory_space<vmem>>, %arg7: memref<3x128x256xf32, #tpu.memory_space<vmem>>, %arg8: memref<1x256xf32, #tpu.memory_space<vmem>>, %arg9: memref<256x256xf32, #tpu.memory_space<vmem>>, %arg10: memref<64x512xf32, #tpu.memory_space<vmem>>, %arg11: memref<1x512xf32, #tpu.memory_space<vmem>>, %arg12: memref<1x8x256xf32, #tpu.memory_space<vmem>>, %arg13: memref<10x128xf32, #tpu.memory_space<vmem>>) attributes {dimension_semantics = [#tpu.dimension_semantics<parallel>], iteration_bounds = array<i64: 2>, scalar_prefetch = 0 : i64, scratch_operands = 1 : i64, tpu.core_type = #tpu.core_type<tc>, window_params = [{transform_indices = @transform_0, window_bounds = array<i64: 1, 1>}, {transform_indices = @transform_1, window_bounds = array<i64: 1, 10, 128>}, {transform_indices = @transform_2, window_bounds = array<i64: 1, 1, 64>}, {pipeline_mode = #tpu.pipeline_mode<synchronous>, transform_indices = @transform_3, window_bounds = array<i64: 3, 128, 128>}, {pipeline_mode = #tpu.pipeline_mode<synchronous>, transform_indices = @transform_4, window_bounds = array<i64: 1, 128>}, {pipeline_mode = #tpu.pipeline_mode<synchronous>, transform_indices = @transform_5, window_bounds = array<i64: 128, 128>}, {pipeline_mode = #tpu.pipeline_mode<synchronous>, transform_indices = @transform_6, window_bounds = array<i64: 3, 128, 256>}, {pipeline_mode = #tpu.pipeline_mode<synchronous>, transform_indices = @transform_7, window_bounds = array<i64: 1, 256>}, {pipeline_mode = #tpu.pipeline_mode<synchronous>, transform_indices = @transform_8, window_bounds = array<i64: 256, 256>}, {pipeline_mode = #tpu.pipeline_mode<synchronous>, transform_indices = @transform_9, window_bounds = array<i64: 64, 512>}, {pipeline_mode = #tpu.pipeline_mode<synchronous>, transform_indices = @transform_10, window_bounds = array<i64: 1, 512>}, {transform_indices = @transform_11, window_bounds = array<i64: 1, 8, 256>}]} {
    %c0 = arith.constant 0 : index
    %c0_0 = arith.constant 0 : index
    %0 = memref.load %arg1[%c0, %c0_0] : memref<1x1xf32, #tpu.memory_space<smem>>
    %c0_1 = arith.constant 0 : index
    %c0_2 = arith.constant 0 : index
    %c0_3 = arith.constant 0 : index
    %1 = vector.load %arg2[%c0_1, %c0_2, %c0_3] : memref<1x10x128xf32, #tpu.memory_space<vmem>>, vector<1x8x128xf32>
    %2 = vector.shape_cast %1 : vector<1x8x128xf32> to vector<8x128xf32>
    %c0_4 = arith.constant 0 : index
    %c0_5 = arith.constant 0 : index
    %c0_6 = arith.constant 0 : index
    %3 = vector.load %arg4[%c0_4, %c0_5, %c0_6] : memref<3x128x128xf32, #tpu.memory_space<vmem>>, vector<1x128x128xf32>
    %4 = vector.shape_cast %3 : vector<1x128x128xf32> to vector<128x128xf32>
    %cst = arith.constant dense<0.000000e+00> : vector<8x128xf32>
    %5 = tpu.matmul %2, %4, %cst {dimension_numbers = #tpu.dot_dimension_numbers<[1], [0], [0], [1], [0, 0, 1, 1], [], []>} : vector<8x128xf32>, vector<128x128xf32>, vector<8x128xf32> -> vector<8x128xf32>
    %c0_7 = arith.constant 0 : index
    %c1 = arith.constant 1 : index
    %c0_8 = arith.constant 0 : index
    %6 = vector.load %arg2[%c0_7, %c1, %c0_8] : memref<1x10x128xf32, #tpu.memory_space<vmem>>, vector<1x8x128xf32>
    %7 = vector.shape_cast %6 : vector<1x8x128xf32> to vector<8x128xf32>
    %c1_9 = arith.constant 1 : index
    %c0_10 = arith.constant 0 : index
    %c0_11 = arith.constant 0 : index
    %8 = vector.load %arg4[%c1_9, %c0_10, %c0_11] : memref<3x128x128xf32, #tpu.memory_space<vmem>>, vector<1x128x128xf32>
    %9 = vector.shape_cast %8 : vector<1x128x128xf32> to vector<128x128xf32>
    %cst_12 = arith.constant dense<0.000000e+00> : vector<8x128xf32>
    %10 = tpu.matmul %7, %9, %cst_12 {dimension_numbers = #tpu.dot_dimension_numbers<[1], [0], [0], [1], [0, 0, 1, 1], [], []>} : vector<8x128xf32>, vector<128x128xf32>, vector<8x128xf32> -> vector<8x128xf32>
    %11 = arith.addf %5, %10 : vector<8x128xf32>
    %c0_13 = arith.constant 0 : index
    %c2 = arith.constant 2 : index
    %c0_14 = arith.constant 0 : index
    %12 = vector.load %arg2[%c0_13, %c2, %c0_14] : memref<1x10x128xf32, #tpu.memory_space<vmem>>, vector<1x8x128xf32>
    %13 = vector.shape_cast %12 : vector<1x8x128xf32> to vector<8x128xf32>
    %c2_15 = arith.constant 2 : index
    %c0_16 = arith.constant 0 : index
    %c0_17 = arith.constant 0 : index
    %14 = vector.load %arg4[%c2_15, %c0_16, %c0_17] : memref<3x128x128xf32, #tpu.memory_space<vmem>>, vector<1x128x128xf32>
    %15 = vector.shape_cast %14 : vector<1x128x128xf32> to vector<128x128xf32>
    %cst_18 = arith.constant dense<0.000000e+00> : vector<8x128xf32>
    %16 = tpu.matmul %13, %15, %cst_18 {dimension_numbers = #tpu.dot_dimension_numbers<[1], [0], [0], [1], [0, 0, 1, 1], [], []>} : vector<8x128xf32>, vector<128x128xf32>, vector<8x128xf32> -> vector<8x128xf32>
    %17 = arith.addf %11, %16 : vector<8x128xf32>
    %c0_19 = arith.constant 0 : index
    %c0_20 = arith.constant 0 : index
    %18 = vector.load %arg5[%c0_19, %c0_20] : memref<1x128xf32, #tpu.memory_space<vmem>>, vector<1x128xf32>
    %19 = vector.broadcast %18 : vector<1x128xf32> to vector<8x128xf32>
    %20 = arith.addf %17, %19 : vector<8x128xf32>
    %cst_21 = arith.constant dense<0.000000e+00> : vector<128xf32>
    %21 = vector.multi_reduction <add>, %20, %cst_21 [0] : vector<8x128xf32> to vector<128xf32>
    %22 = vector.shape_cast %21 : vector<128xf32> to vector<1x128xf32>
    %23 = arith.mulf %20, %20 : vector<8x128xf32>
    %cst_22 = arith.constant dense<0.000000e+00> : vector<128xf32>
    %24 = vector.multi_reduction <add>, %23, %cst_22 [0] : vector<8x128xf32> to vector<128xf32>
    %25 = vector.shape_cast %24 : vector<128xf32> to vector<1x128xf32>
    %c0_23 = arith.constant 0 : index
    %c0_24 = arith.constant 0 : index
    %26 = vector.load %arg6[%c0_23, %c0_24] : memref<128x128xf32, #tpu.memory_space<vmem>>, vector<128x128xf32>
    %cst_25 = arith.constant dense<0.000000e+00> : vector<1x128xf32>
    %27 = tpu.matmul %22, %26, %cst_25 {dimension_numbers = #tpu.dot_dimension_numbers<[1], [0], [0], [1], [0, 0, 1, 1], [], []>} : vector<1x128xf32>, vector<128x128xf32>, vector<1x128xf32> -> vector<1x128xf32>
    %c0_26 = arith.constant 0 : index
    %c0_27 = arith.constant 0 : index
    %28 = vector.load %arg6[%c0_26, %c0_27] : memref<128x128xf32, #tpu.memory_space<vmem>>, vector<128x128xf32>
    %cst_28 = arith.constant dense<0.000000e+00> : vector<1x128xf32>
    %29 = tpu.matmul %25, %28, %cst_28 {dimension_numbers = #tpu.dot_dimension_numbers<[1], [0], [0], [1], [0, 0, 1, 1], [], []>} : vector<1x128xf32>, vector<128x128xf32>, vector<1x128xf32> -> vector<1x128xf32>
    %30 = arith.mulf %27, %27 : vector<1x128xf32>
    %31 = arith.subf %29, %30 : vector<1x128xf32>
    %32 = vector.broadcast %27 : vector<1x128xf32> to vector<8x128xf32>
    %33 = arith.subf %20, %32 : vector<8x128xf32>
    %cst_29 = arith.constant 9.99999974E-6 : f32
    %34 = vector.broadcast %cst_29 : f32 to vector<1x128xf32>
    %35 = arith.addf %31, %34 : vector<1x128xf32>
    %36 = math.rsqrt %35 : vector<1x128xf32>
    %37 = vector.broadcast %36 : vector<1x128xf32> to vector<8x128xf32>
    %38 = arith.mulf %33, %37 : vector<8x128xf32>
    %cst_30 = arith.constant 0.000000e+00 : f32
    %39 = vector.broadcast %cst_30 : f32 to vector<8x128xf32>
    %40 = arith.maximumf %38, %39 : vector<8x128xf32>
    %cst_31 = arith.constant 0.000000e+00 : f32
    %41 = vector.broadcast %cst_31 : f32 to vector<10x128xf32>
    %c0_32 = arith.constant 0 : index
    %c0_33 = arith.constant 0 : index
    %42 = vector.load %arg13[%c0_32, %c0_33] : memref<10x128xf32, #tpu.memory_space<vmem>>, vector<10x128xf32>
    tpu.vector_store %arg13[%c0_32, %c0_33], %41 {strides = array<i32>} : memref<10x128xf32, #tpu.memory_space<vmem>>, vector<10x128xf32>,
    %c1_34 = arith.constant 1 : index
    %c0_35 = arith.constant 0 : index
    %43 = vector.load %arg13[%c1_34, %c0_35] : memref<10x128xf32, #tpu.memory_space<vmem>>, vector<8x128xf32>
    tpu.vector_store %arg13[%c1_34, %c0_35], %40 {strides = array<i32>} : memref<10x128xf32, #tpu.memory_space<vmem>>, vector<8x128xf32>,
    %c0_36 = arith.constant 0 : index
    %c0_37 = arith.constant 0 : index
    %44 = vector.load %arg13[%c0_36, %c0_37] : memref<10x128xf32, #tpu.memory_space<vmem>>, vector<8x128xf32>
    %c0_38 = arith.constant 0 : index
    %c0_39 = arith.constant 0 : index
    %c0_40 = arith.constant 0 : index
    %45 = vector.load %arg7[%c0_38, %c0_39, %c0_40] : memref<3x128x256xf32, #tpu.memory_space<vmem>>, vector<1x128x256xf32>
    %46 = vector.shape_cast %45 : vector<1x128x256xf32> to vector<128x256xf32>
    %cst_41 = arith.constant dense<0.000000e+00> : vector<8x256xf32>
    %47 = tpu.matmul %44, %46, %cst_41 {dimension_numbers = #tpu.dot_dimension_numbers<[1], [0], [0], [1], [0, 0, 1, 1], [], []>} : vector<8x128xf32>, vector<128x256xf32>, vector<8x256xf32> -> vector<8x256xf32>
    %c1_42 = arith.constant 1 : index
    %c0_43 = arith.constant 0 : index
    %48 = vector.load %arg13[%c1_42, %c0_43] : memref<10x128xf32, #tpu.memory_space<vmem>>, vector<8x128xf32>
    %c1_44 = arith.constant 1 : index
    %c0_45 = arith.constant 0 : index
    %c0_46 = arith.constant 0 : index
    %49 = vector.load %arg7[%c1_44, %c0_45, %c0_46] : memref<3x128x256xf32, #tpu.memory_space<vmem>>, vector<1x128x256xf32>
    %50 = vector.shape_cast %49 : vector<1x128x256xf32> to vector<128x256xf32>
    %cst_47 = arith.constant dense<0.000000e+00> : vector<8x256xf32>
    %51 = tpu.matmul %48, %50, %cst_47 {dimension_numbers = #tpu.dot_dimension_numbers<[1], [0], [0], [1], [0, 0, 1, 1], [], []>} : vector<8x128xf32>, vector<128x256xf32>, vector<8x256xf32> -> vector<8x256xf32>
    %52 = arith.addf %47, %51 : vector<8x256xf32>
    %c2_48 = arith.constant 2 : index
    %c0_49 = arith.constant 0 : index
    %53 = vector.load %arg13[%c2_48, %c0_49] : memref<10x128xf32, #tpu.memory_space<vmem>>, vector<8x128xf32>
    %c2_50 = arith.constant 2 : index
    %c0_51 = arith.constant 0 : index
    %c0_52 = arith.constant 0 : index
    %54 = vector.load %arg7[%c2_50, %c0_51, %c0_52] : memref<3x128x256xf32, #tpu.memory_space<vmem>>, vector<1x128x256xf32>
    %55 = vector.shape_cast %54 : vector<1x128x256xf32> to vector<128x256xf32>
    %cst_53 = arith.constant dense<0.000000e+00> : vector<8x256xf32>
    %56 = tpu.matmul %53, %55, %cst_53 {dimension_numbers = #tpu.dot_dimension_numbers<[1], [0], [0], [1], [0, 0, 1, 1], [], []>} : vector<8x128xf32>, vector<128x256xf32>, vector<8x256xf32> -> vector<8x256xf32>
    %57 = arith.addf %52, %56 : vector<8x256xf32>
    %c0_54 = arith.constant 0 : index
    %c0_55 = arith.constant 0 : index
    %58 = vector.load %arg8[%c0_54, %c0_55] : memref<1x256xf32, #tpu.memory_space<vmem>>, vector<1x256xf32>
    %59 = vector.broadcast %58 : vector<1x256xf32> to vector<8x256xf32>
    %60 = arith.addf %57, %59 : vector<8x256xf32>
    %cst_56 = arith.constant dense<0.000000e+00> : vector<256xf32>
    %61 = vector.multi_reduction <add>, %60, %cst_56 [0] : vector<8x256xf32> to vector<256xf32>
    %62 = vector.shape_cast %61 : vector<256xf32> to vector<1x256xf32>
    %63 = arith.mulf %60, %60 : vector<8x256xf32>
    %cst_57 = arith.constant dense<0.000000e+00> : vector<256xf32>
    %64 = vector.multi_reduction <add>, %63, %cst_57 [0] : vector<8x256xf32> to vector<256xf32>
    %65 = vector.shape_cast %64 : vector<256xf32> to vector<1x256xf32>
    %c0_58 = arith.constant 0 : index
    %c0_59 = arith.constant 0 : index
    %66 = vector.load %arg9[%c0_58, %c0_59] : memref<256x256xf32, #tpu.memory_space<vmem>>, vector<256x256xf32>
    %cst_60 = arith.constant dense<0.000000e+00> : vector<1x256xf32>
    %67 = tpu.matmul %62, %66, %cst_60 {dimension_numbers = #tpu.dot_dimension_numbers<[1], [0], [0], [1], [0, 0, 1, 1], [], []>} : vector<1x256xf32>, vector<256x256xf32>, vector<1x256xf32> -> vector<1x256xf32>
    %c0_61 = arith.constant 0 : index
    %c0_62 = arith.constant 0 : index
    %68 = vector.load %arg9[%c0_61, %c0_62] : memref<256x256xf32, #tpu.memory_space<vmem>>, vector<256x256xf32>
    %cst_63 = arith.constant dense<0.000000e+00> : vector<1x256xf32>
    %69 = tpu.matmul %65, %68, %cst_63 {dimension_numbers = #tpu.dot_dimension_numbers<[1], [0], [0], [1], [0, 0, 1, 1], [], []>} : vector<1x256xf32>, vector<256x256xf32>, vector<1x256xf32> -> vector<1x256xf32>
    %70 = arith.mulf %67, %67 : vector<1x256xf32>
    %71 = arith.subf %69, %70 : vector<1x256xf32>
    %72 = vector.broadcast %67 : vector<1x256xf32> to vector<8x256xf32>
    %73 = arith.subf %60, %72 : vector<8x256xf32>
    %cst_64 = arith.constant 9.99999974E-6 : f32
    %74 = vector.broadcast %cst_64 : f32 to vector<1x256xf32>
    %75 = arith.addf %71, %74 : vector<1x256xf32>
    %76 = math.rsqrt %75 : vector<1x256xf32>
    %77 = vector.broadcast %76 : vector<1x256xf32> to vector<8x256xf32>
    %78 = arith.mulf %73, %77 : vector<8x256xf32>
    %c0_65 = arith.constant 0 : index
    %c0_66 = arith.constant 0 : index
    %c0_67 = arith.constant 0 : index
    %79 = vector.load %arg3[%c0_65, %c0_66, %c0_67] : memref<1x1x64xf32, #tpu.memory_space<vmem>>, vector<1x1x64xf32>
    %80 = vector.shape_cast %79 : vector<1x1x64xf32> to vector<1x64xf32>
    %c0_68 = arith.constant 0 : index
    %c0_69 = arith.constant 0 : index
    %81 = vector.load %arg10[%c0_68, %c0_69] : memref<64x512xf32, #tpu.memory_space<vmem>>, vector<64x512xf32>
    %cst_70 = arith.constant dense<0.000000e+00> : vector<1x512xf32>
    %82 = tpu.matmul %80, %81, %cst_70 {dimension_numbers = #tpu.dot_dimension_numbers<[1], [0], [0], [1], [0, 0, 1, 1], [], []>} : vector<1x64xf32>, vector<64x512xf32>, vector<1x512xf32> -> vector<1x512xf32>
    %c0_71 = arith.constant 0 : index
    %c0_72 = arith.constant 0 : index
    %83 = vector.load %arg11[%c0_71, %c0_72] : memref<1x512xf32, #tpu.memory_space<vmem>>, vector<1x512xf32>
    %84 = arith.addf %82, %83 : vector<1x512xf32>
    %85 = vector.extract_strided_slice %84 {offsets = [0, 0], sizes = [1, 256], strides = [1, 1]} : vector<1x512xf32> to vector<1x256xf32>
    %86 = vector.extract_strided_slice %84 {offsets = [0, 256], sizes = [1, 256], strides = [1, 1]} : vector<1x512xf32> to vector<1x256xf32>
    %cst_73 = arith.constant 0.000000e+00 : f32
    %87 = vector.broadcast %cst_73 : f32 to vector<1x256xf32>
    %88 = arith.maximumf %86, %87 : vector<1x256xf32>
    %89 = vector.broadcast %0 : f32 to vector<1x256xf32>
    %90 = arith.mulf %88, %89 : vector<1x256xf32>
    %cst_74 = arith.constant 1.000000e+00 : f32
    %91 = arith.subf %cst_74, %0 : f32
    %92 = vector.broadcast %91 : f32 to vector<1x256xf32>
    %93 = arith.addf %90, %92 : vector<1x256xf32>
    %94 = vector.broadcast %0 : f32 to vector<1x256xf32>
    %95 = arith.mulf %85, %94 : vector<1x256xf32>
    %96 = vector.broadcast %93 : vector<1x256xf32> to vector<8x256xf32>
    %97 = arith.mulf %78, %96 : vector<8x256xf32>
    %98 = vector.broadcast %95 : vector<1x256xf32> to vector<8x256xf32>
    %99 = arith.addf %97, %98 : vector<8x256xf32>
    %cst_75 = arith.constant 0.000000e+00 : f32
    %100 = vector.broadcast %cst_75 : f32 to vector<8x256xf32>
    %101 = arith.cmpf oge, %99, %100 : vector<8x256xf32>
    %cst_76 = arith.constant 0.00999999977 : f32
    %102 = vector.broadcast %cst_76 : f32 to vector<8x256xf32>
    %103 = arith.mulf %102, %99 : vector<8x256xf32>
    %104 = arith.select %101, %99, %103 : vector<8x256xi1>, vector<8x256xf32>
    %c0_77 = arith.constant 0 : index
    %c0_78 = arith.constant 0 : index
    %c0_79 = arith.constant 0 : index
    %105 = vector.load %arg12[%c0_77, %c0_78, %c0_79] : memref<1x8x256xf32, #tpu.memory_space<vmem>>, vector<1x8x256xf32>
    %106 = vector.shape_cast %105 : vector<1x8x256xf32> to vector<8x256xf32>
    %107 = vector.shape_cast %104 : vector<8x256xf32> to vector<1x8x256xf32>
    tpu.vector_store %arg12[%c0_77, %c0_78, %c0_79], %107 {strides = array<i32>} : memref<1x8x256xf32, #tpu.memory_space<vmem>>, vector<1x8x256xf32>,
    return
  }
  func.func @transform_0(%arg0: i32) -> (i32, i32) {
    %c0_i32 = arith.constant 0 : i32
    %c0_i32_0 = arith.constant 0 : i32
    %c0_i32_1 = arith.constant 0 : i32
    return %c0_i32, %c0_i32_0 : i32, i32
  }
  func.func @transform_1(%arg0: i32) -> (i32, i32, i32) {
    %c0_i32 = arith.constant 0 : i32
    %c0_i32_0 = arith.constant 0 : i32
    %c0_i32_1 = arith.constant 0 : i32
    return %arg0, %c0_i32, %c0_i32_0 : i32, i32, i32
  }
  func.func @transform_2(%arg0: i32) -> (i32, i32, i32) {
    %c0_i32 = arith.constant 0 : i32
    %c0_i32_0 = arith.constant 0 : i32
    %c0_i32_1 = arith.constant 0 : i32
    return %arg0, %c0_i32, %c0_i32_0 : i32, i32, i32
  }
  func.func @transform_3(%arg0: i32) -> (i32, i32, i32) {
    %c0_i32 = arith.constant 0 : i32
    %c0_i32_0 = arith.constant 0 : i32
    %c0_i32_1 = arith.constant 0 : i32
    %c0_i32_2 = arith.constant 0 : i32
    return %c0_i32, %c0_i32_0, %c0_i32_1 : i32, i32, i32
  }
  func.func @transform_4(%arg0: i32) -> (i32, i32) {
    %c0_i32 = arith.constant 0 : i32
    %c0_i32_0 = arith.constant 0 : i32
    %c0_i32_1 = arith.constant 0 : i32
    return %c0_i32, %c0_i32_0 : i32, i32
  }
  func.func @transform_5(%arg0: i32) -> (i32, i32) {
    %c0_i32 = arith.constant 0 : i32
    %c0_i32_0 = arith.constant 0 : i32
    %c0_i32_1 = arith.constant 0 : i32
    return %c0_i32, %c0_i32_0 : i32, i32
  }
  func.func @transform_6(%arg0: i32) -> (i32, i32, i32) {
    %c0_i32 = arith.constant 0 : i32
    %c0_i32_0 = arith.constant 0 : i32
    %c0_i32_1 = arith.constant 0 : i32
    %c0_i32_2 = arith.constant 0 : i32
    return %c0_i32, %c0_i32_0, %c0_i32_1 : i32, i32, i32
  }
  func.func @transform_7(%arg0: i32) -> (i32, i32) {
    %c0_i32 = arith.constant 0 : i32
    %c0_i32_0 = arith.constant 0 : i32
    %c0_i32_1 = arith.constant 0 : i32
    return %c0_i32, %c0_i32_0 : i32, i32
  }
  func.func @transform_8(%arg0: i32) -> (i32, i32) {
    %c0_i32 = arith.constant 0 : i32
    %c0_i32_0 = arith.constant 0 : i32
    %c0_i32_1 = arith.constant 0 : i32
    return %c0_i32, %c0_i32_0 : i32, i32
  }
  func.func @transform_9(%arg0: i32) -> (i32, i32) {
    %c0_i32 = arith.constant 0 : i32
    %c0_i32_0 = arith.constant 0 : i32
    %c0_i32_1 = arith.constant 0 : i32
    return %c0_i32, %c0_i32_0 : i32, i32
  }
  func.func @transform_10(%arg0: i32) -> (i32, i32) {
    %c0_i32 = arith.constant 0 : i32
    %c0_i32_0 = arith.constant 0 : i32
    %c0_i32_1 = arith.constant 0 : i32
    return %c0_i32, %c0_i32_0 : i32, i32
  }
  func.func @transform_11(%arg0: i32) -> (i32, i32, i32) {
    %c0_i32 = arith.constant 0 : i32
    %c0_i32_0 = arith.constant 0 : i32
    %c0_i32_1 = arith.constant 0 : i32
    return %arg0, %c0_i32, %c0_i32_0 : i32, i32, i32
  }
}

</mosaic_0001>

<bundles_post_ra>
// kernel: tile.73
= control target key start
LH: loop header
LB: loop body
LE: loop exit
PB: predicated region body
PF: predicated region fallthrough
CT: control target
= control target key end

     0   :  { %s22_s0 = inlined_call_operand.vmem [shape: f32[32], index: 0, kind: input, shape index: {}]   ;;  %s23_s1 = inlined_call_operand.vmem [shape: f32[8,32], index: 1, kind: output, shape index: {}]  }
   0x1   :  { %v4_v0 = vld [vmem:[%s22_s0] ss:$0 sm:$0xff] }
   0x2   :  { %5 = vst [vmem:[%s23_s1] sm:$0xff] %v4_v0 }

// kernel: tile.74
= control target key start
LH: loop header
LB: loop body
LE: loop exit
PB: predicated region body
PF: predicated region fallthrough
CT: control target
= control target key end

     0   :  { %s7_s6 = smov 3  ;;  %s39_s9 = smov 96   ;;  %vm4_vm0 = vcmask 261120   ;;  %vm11_vm1 = vcmask 1048320   ;;  %vm18_vm2 = vcmask 785920   ;;  %vm25_vm3 = vcmask 523520   ;;  %s67_s0 = inlined_call_operand.vmem [shape: f32[8,32], index: 0, kind: input, shape index: {}]   ;;  %s68_s1 = inlined_call_operand.vmem [shape: f32[256], index: 1, kind: output, shape index: {}]  }
   0x1   :  { %v33_v0 = vld [vmem:[%s67_s0 + $0x3] ss:$4 sm:%s7_s6]   ;;  %s21_s10 = smov 3  ;;  %s14_s13 = smov 3 }
   0x2   :  { %9 = vrot.lane.b32.xlu0 %v33_v0, %s39_s9  ;;  %v35_v1 = vld [vmem:[%s67_s0 + $0x1] ss:$4 sm:%s21_s10]   ;;  %s40_s14 = smov 32   ;;  %s41_s17 = smov 64  }
   0x3   :  { %23 = vrot.lane.b32.xlu1 %v35_v1, %s40_s14  ;;  %v34_v2 = vld [vmem:[%s67_s0 + $0x2] ss:$4 sm:%s14_s13]   ;;  %s2_s18 = smov 3 }
   0x4   :  { %v3_v3 = vld [vmem:[%s67_s0] ss:$4 sm:%s2_s18]  }
   0x5   :  { %5 = vst.msk [vmem:[#allocation0] sm:$0x3] %vm4_vm0, %v3_v3  }
   0xa   :  { %16 = vrot.lane.b32.xlu0 %v34_v2, %s41_s17 }
  0x74   :  { %v10_v4 = vpop.permute.xlu0 %9  }
  0x75   :  { %12 = vst.msk [vmem:[#allocation0] sm:$0x3] %vm11_vm1, %v10_v4   ;;  %v24_v5 = vpop.permute.xlu1 %23  }
  0x7c   :  { %v17_v6 = vpop.permute.xlu0 %16  }
  0x7d   :  { %19 = vst.msk [vmem:[#allocation0] sm:$0x3] %vm18_vm2, %v17_v6  }
  0x7e   :  { %26 = vst.msk [vmem:[#allocation0] sm:$0x3] %vm25_vm3, %v24_v5  }
  0x85   :  { %v29_v7 = vld [vmem:[#allocation0] sm:$0x3] }
  0x86   :  { %32 = vst [vmem:[%s68_s1] sm:$0x3] %v29_v7 }

// kernel: tile.49
= control target key start
LH: loop header
LB: loop body
LE: loop exit
PB: predicated region body
PF: predicated region fallthrough
CT: control target
= control target key end

     0   :  { %s7_s6 = smov 3  ;;  %s46_s9 = smov 96   ;;  %vm4_vm0 = vcmask 261120   ;;  %vm11_vm1 = vcmask 1048320   ;;  %vm18_vm2 = vcmask 785920   ;;  %vm25_vm3 = vcmask 523520   ;;  %s77_s0 = inlined_call_operand.vmem [shape: f32[8,32], index: 0, kind: input, shape index: {}]   ;;  %s78_s1 = inlined_call_operand.vmem [shape: f32[1,256], index: 1, kind: output, shape index: {}]  }
   0x1   :  { %v39_v0 = vld [vmem:[%s77_s0 + $0x3] ss:$4 sm:%s7_s6]   ;;  %s21_s10 = smov 3  ;;  %s14_s13 = smov 3 }
   0x2   :  { %9 = vrot.lane.b32.xlu0 %v39_v0, %s46_s9  ;;  %v41_v1 = vld [vmem:[%s77_s0 + $0x1] ss:$4 sm:%s21_s10]   ;;  %s47_s14 = smov 32   ;;  %s48_s17 = smov 64  }
   0x3   :  { %23 = vrot.lane.b32.xlu1 %v41_v1, %s47_s14  ;;  %v40_v2 = vld [vmem:[%s77_s0 + $0x2] ss:$4 sm:%s14_s13]   ;;  %s2_s18 = smov 3 }
   0x4   :  { %v3_v3 = vld [vmem:[%s77_s0] ss:$4 sm:%s2_s18]  }
   0x5   :  { %5 = vst.msk [vmem:[#allocation0] ss:$8 sm:$0x3] %vm4_vm0, %v3_v3  }
   0xa   :  { %16 = vrot.lane.b32.xlu0 %v40_v2, %s48_s17 }
  0x74   :  { %v10_v4 = vpop.permute.xlu0 %9  }
  0x75   :  { %12 = vst.msk [vmem:[#allocation0] ss:$8 sm:$0x3] %vm11_vm1, %v10_v4   ;;  %v24_v5 = vpop.permute.xlu1 %23  }
  0x7c   :  { %v17_v6 = vpop.permute.xlu0 %16  }
  0x7d   :  { %19 = vst.msk [vmem:[#allocation0] ss:$8 sm:$0x3] %vm18_vm2, %v17_v6  }
  0x7e   :  { %26 = vst.msk [vmem:[#allocation0] ss:$8 sm:$0x3] %vm25_vm3, %v24_v5  }
  0x85   :  { %v29_v7 = vld [vmem:[#allocation0] sm:$0x1]  ;;  %v34_v8 = vld [vmem:[#allocation0 + $0x8] sm:$0x1] }
  0x86   :  { %32 = vst [vmem:[%s78_s1] sm:$0x1] %v29_v7 }
  0x87   :  { %42 = vst [vmem:[%s78_s1 + $0x1] sm:$0x1] %v34_v8 }

// kernel: tile.43
= control target key start
LH: loop header
LB: loop body
LE: loop exit
PB: predicated region body
PF: predicated region fallthrough
CT: control target
= control target key end

     0   :  { %s22_s0 = inlined_call_operand.vmem [shape: f32[16], index: 0, kind: input, shape index: {}]   ;;  %s23_s1 = inlined_call_operand.vmem [shape: f32[8,16], index: 1, kind: output, shape index: {}]  }
   0x1   :  { %v4_v0 = vld [vmem:[%s22_s0] ss:$0 sm:$0xff] }
   0x2   :  { %5 = vst [vmem:[%s23_s1] sm:$0xff] %v4_v0 }

// kernel: tile.44
= control target key start
LH: loop header
LB: loop body
LE: loop exit
PB: predicated region body
PF: predicated region fallthrough
CT: control target
= control target key end

     0   :  { %s67_s10 = smov 112   ;;  %s68_s11 = smov 80   ;;  %vm3_vm0 = vcmask 130048   ;;  %vm9_vm1 = vcmask 1048448   ;;  %vm15_vm2 = vcmask 917248   ;;  %vm21_vm3 = vcmask 786048   ;;  %s111_s0 = inlined_call_operand.vmem [shape: f32[8,16], index: 0, kind: input, shape index: {}]   ;;  %s112_s1 = inlined_call_operand.vmem [shape: f32[1,128], index: 1, kind: output, shape index: {}]  }
   0x1   :  { %v53_v0 = vld [vmem:[%s111_s0 + $0x7] sm:$0x1]   ;;  %v55_v1 = vld [vmem:[%s111_s0 + $0x5] sm:$0x1]   ;;  %v57_v2 = vld [vmem:[%s111_s0 + $0x3] sm:$0x1]  }
   0x2   :  { %7 = vrot.lane.b32.xlu0 %v53_v0, %s67_s10  ;;  %19 = vrot.lane.b32.xlu1 %v55_v1, %s68_s11  ;;  %s69_s14 = smov 48   ;;  %v54_v3 = vld [vmem:[%s111_s0 + $0x6] sm:$0x1]   ;;  %v56_v4 = vld [vmem:[%s111_s0 + $0x4] sm:$0x1]   ;;  %s70_s21 = smov 96  }
   0x3   :  { %31 = vrot.lane.b32.xlu2 %v57_v2, %s69_s14  ;;  %v58_v5 = vld [vmem:[%s111_s0 + $0x2] sm:$0x1]   ;;  %s71_s22 = smov 64   ;;  %s72_s23 = smov 32   ;;  %v59_v6 = vld [vmem:[%s111_s0 + $0x1] sm:$0x1]  }
   0x4   :  { %s73_s26 = smov 16   ;;  %v2_v7 = vld [vmem:[%s111_s0] sm:$0x1]   ;;  %vm27_vm4 = vcmask 654848   ;;  %vm33_vm5 = vcmask 523648   ;;  %vm39_vm6 = vcmask 392448  }
   0x5   :  { %4 = vst.msk [vmem:[#allocation0] sm:$0x1] %vm3_vm0, %v2_v7   ;;  %vm45_vm7 = vcmask 261248  }
   0xa   :  { %13 = vrot.lane.b32.xlu0 %v54_v3, %s70_s21  ;;  %25 = vrot.lane.b32.xlu1 %v56_v4, %s71_s22 }
   0xb   :  { %37 = vrot.lane.b32.xlu2 %v58_v5, %s72_s23 }
  0x12   :  { %43 = vrot.lane.b32.xlu0 %v59_v6, %s73_s26 }
  0x5d   :  { %v32_v8 = vpop.permute.xlu2 %31  }
  0x65   :  { %v38_v9 = vpop.permute.xlu2 %37  }
  0x74   :  { %v8_v10 = vpop.permute.xlu0 %7   ;;  %v20_v11 = vpop.permute.xlu1 %19  }
  0x75   :  { %10 = vst.msk [vmem:[#allocation0] sm:$0x1] %vm9_vm1, %v8_v10  }
  0x7c   :  { %v14_v12 = vpop.permute.xlu0 %13   ;;  %v26_v13 = vpop.permute.xlu1 %25  }
  0x7d   :  { %16 = vst.msk [vmem:[#allocation0] sm:$0x1] %vm15_vm2, %v14_v12  }
  0x7e   :  { %22 = vst.msk [vmem:[#allocation0] sm:$0x1] %vm21_vm3, %v20_v11  }
  0x7f   :  { %28 = vst.msk [vmem:[#allocation0] sm:$0x1] %vm27_vm4, %v26_v13  }
  0x80   :  { %34 = vst.msk [vmem:[#allocation0] sm:$0x1] %vm33_vm5, %v32_v8  }
  0x81   :  { %40 = vst.msk [vmem:[#allocation0] sm:$0x1] %vm39_vm6, %v38_v9  }
  0x84   :  { %v44_v14 = vpop.permute.xlu0 %43  }
  0x85   :  { %46 = vst.msk [vmem:[#allocation0] sm:$0x1] %vm45_vm7, %v44_v14  }
  0x8c   :  { %v49_v15 = vld [vmem:[#allocation0] sm:$0x1] }
  0x8d   :  { %52 = vst [vmem:[%s112_s1] sm:$0x1] %v49_v15 }

// kernel: down_half_polyphase_forward.1
= control target key start
LH: loop header
LB: loop body
LE: loop exit
PB: predicated region body
PF: predicated region fallthrough
CT: control target
= control target key end

     0   :  { %s1546_s19 = smov 0   ;;  %s2647_s0 = inlined_call_operand.<no memory space> [shape: f32[1,1], index: 0, kind: input, shape index: {}]   ;;  %s2648_s1 = inlined_call_operand.vmem [shape: f32[2,10,128], index: 1, kind: input, shape index: {}]   ;;  %s2649_s2 = inlined_call_operand.vmem [shape: f32[2,1,64], index: 2, kind: input, shape index: {}]   ;;  %s2650_s3 = inlined_call_operand.vmem [shape: f32[3,128,128], index: 3, kind: input, shape index: {}]   ;;  %s2651_s4 = inlined_call_operand.vmem [shape: f32[1,128], index: 4, kind: input, shape index: {}]   ;;  %s2652_s5 = inlined_call_operand.vmem [shape: f32[128,128], index: 5, kind: input, shape index: {}]   ;;  %s2653_s6 = inlined_call_operand.vmem [shape: f32[3,128,256], index: 6, kind: input, shape index: {}]   ;;  %s2654_s7 = inlined_call_operand.vmem [shape: f32[1,256], index: 7, kind: input, shape index: {}]   ;;  %s2655_s8 = inlined_call_operand.vmem [shape: f32[256,256], index: 8, kind: input, shape index: {}]   ;;  %s2656_s9 = inlined_call_operand.vmem [shape: f32[64,512], index: 9, kind: input, shape index: {}]   ;;  %s2657_s10 = inlined_call_operand.vmem [shape: f32[1,512], index: 10, kind: input, shape index: {}]   ;;  %s2658_s11 = inlined_call_operand.vmem [shape: f32[2,8,256], index: 11, kind: output, shape index: {}]  }
   0x1   :  { %16 = sst [smem:[#allocation3]] %s2647_s0 }
   0x2 LB: > { %s1345_s20 = sadd.s32 4294967295, %s1480_s19   ;;  %p1349_p0 = scmp.ge.s32.totalorder %s1480_s19, 1  ;;  %s1480_s19 = sphi %s1546_s19, %s22_s19  }
   0x3   : > { %p346_p1 = scmp.lt.s32.totalorder %s1480_s19, 3 }
   0x5   : > { %p347_p2 = pnand %p1349_p0, %p346_p1 }
   0x6   : > { %p1637_p3 = scmp.lt.s32.totalorder (!%p347_p2), %s1345_s20, 1  ;;  %s402_s12 = sld [smem:[#allocation3]] (!%p347_p2) }
   0x7   : > { %350 = sbr.rel (%p347_p2) target bundleno = 690 (0x2b2), region = 64 }
   0xc   : > { %v1385_v0 = vld [vmem:[%s2650_s3 + $0x178] sm:$0xff]  ;;  %v1384_v1 = vld [vmem:[%s2650_s3 + $0x170] sm:$0xff]  ;;  %v1383_v5 = vld [vmem:[%s2650_s3 + $0x168] sm:$0xff]  ;;  %s2661_s20 = smov (!%p1637_p3, %s1345_s20), 1  ;;  %vm1170_vm3 = vcmask 523264  }
   0xd   : > { %v1369_v2 = vld [vmem:[%s2650_s3 + $0xf8] sm:$0xff]  ;;  %496 = vmatpush.msra.mxu2 %v1385_v0  ;;  %v1368_v4 = vld [vmem:[%s2650_s3 + $0xf0] sm:$0xff]  ;;  %v1367_v7 = vld [vmem:[%s2650_s3 + $0xe8] sm:$0xff]  ;;  %s1456_s16 = sshll.u32 %s2661_s20, 4  ;;  %s396_s0 = scalar_lea.vmem %s2649_s2, %s2661_s20 }
   0xe   : > { %438 = vmatpush.msra.mxu0 %v1369_v2  ;;  %v419_v3 = vld [vmem:[%s2650_s3 + $0x78] sm:$0xff]  ;;  %v418_v6 = vld [vmem:[%s2650_s3 + $0x70] sm:$0xff]  ;;  %v417_v8 = vld [vmem:[%s2650_s3 + $0x68] sm:$0xff]  ;;  %s393_s13 = scalar_lea.vmem %s2648_s1, %s1456_s16  ;;  %s401_s17 = scalar_lea.vmem %s2658_s11, %s1456_s16 }
   0xf   : > { %458 = vmatpush.msra.mxu1 %v419_v3  ;;  %497 = vmatpush.msra.mxu2 %v1384_v1  ;;  %v1382_v9 = vld [vmem:[%s2650_s3 + $0x160] sm:$0xff]  ;;  %v1381_v12 = vld [vmem:[%s2650_s3 + $0x158] sm:$0xff]  ;;  %v1380_v15 = vld [vmem:[%s2650_s3 + $0x150] sm:$0xff] }
  0x10   : > { %439 = vmatpush.msra.mxu0 %v1368_v4  ;;  %v1366_v10 = vld [vmem:[%s2650_s3 + $0xe0] sm:$0xff]  ;;  %v1365_v13 = vld [vmem:[%s2650_s3 + $0xd8] sm:$0xff]  ;;  %v1364_v16 = vld [vmem:[%s2650_s3 + $0xd0] sm:$0xff] }
  0x11   : > { %459 = vmatpush.msra.mxu1 %v418_v6  ;;  %498 = vmatpush.msra.mxu2 %v1383_v5  ;;  %v416_v11 = vld [vmem:[%s2650_s3 + $0x60] sm:$0xff]  ;;  %v415_v14 = vld [vmem:[%s2650_s3 + $0x58] sm:$0xff]  ;;  %v414_v17 = vld [vmem:[%s2650_s3 + $0x50] sm:$0xff] }
  0x12   : > { %440 = vmatpush.msra.mxu0 %v1367_v7  ;;  %v1379_v18 = vld [vmem:[%s2650_s3 + $0x148] sm:$0xff]  ;;  %v1378_v21 = vld [vmem:[%s2650_s3 + $0x140] sm:$0xff]  ;;  %v1377_v24 = vld [vmem:[%s2650_s3 + $0x138] sm:$0xff] }
  0x13   : > { %460 = vmatpush.msra.mxu1 %v417_v8  ;;  %499 = vmatpush.msra.mxu2 %v1382_v9  ;;  %v1363_v19 = vld [vmem:[%s2650_s3 + $0xc8] sm:$0xff]  ;;  %v1362_v22 = vld [vmem:[%s2650_s3 + $0xc0] sm:$0xff]  ;;  %v1361_v25 = vld [vmem:[%s2650_s3 + $0xb8] sm:$0xff] }
  0x14   : > { %441 = vmatpush.msra.mxu0 %v1366_v10  ;;  %v413_v20 = vld [vmem:[%s2650_s3 + $0x48] sm:$0xff]  ;;  %v412_v23 = vld [vmem:[%s2650_s3 + $0x40] sm:$0xff]  ;;  %v411_v26 = vld [vmem:[%s2650_s3 + $0x38] sm:$0xff] }
  0x15   : > { %461 = vmatpush.msra.mxu1 %v416_v11  ;;  %500 = vmatpush.msra.mxu2 %v1381_v12  ;;  %v1376_v27 = vld [vmem:[%s2650_s3 + $0x130] sm:$0xff]  ;;  %v550_v30 = vld [vmem:[%s2652_s5 + $0x78] sm:$0xff]  ;;  %v1375_v32 = vld [vmem:[%s2650_s3 + $0x128] sm:$0xff] }
  0x16   : > { %442 = vmatpush.msra.mxu0 %v1365_v13  ;;  %v1360_v28 = vld [vmem:[%s2650_s3 + $0xb0] sm:$0xff]  ;;  %v1359_v33 = vld [vmem:[%s2650_s3 + $0xa8] sm:$0xff]  ;;  %551 = vmatpush.msra.mxu3 %v550_v30  ;;  %v1374_v36 = vld [vmem:[%s2650_s3 + $0x120] sm:$0xff] }
  0x17   : > { %462 = vmatpush.msra.mxu1 %v415_v14  ;;  %501 = vmatpush.msra.mxu2 %v1380_v15  ;;  %v410_v29 = vld [vmem:[%s2650_s3 + $0x30] sm:$0xff]  ;;  %v409_v34 = vld [vmem:[%s2650_s3 + $0x28] sm:$0xff]  ;;  %v1358_v37 = vld [vmem:[%s2650_s3 + $0xa0] sm:$0xff] }
  0x18   : > { %443 = vmatpush.msra.mxu0 %v1364_v16  ;;  %v549_v31 = vld [vmem:[%s2652_s5 + $0x70] sm:$0xff]  ;;  %v548_v35 = vld [vmem:[%s2652_s5 + $0x68] sm:$0xff]  ;;  %v408_v38 = vld [vmem:[%s2650_s3 + $0x20] sm:$0xff] }
  0x19   : > { %463 = vmatpush.msra.mxu1 %v414_v17  ;;  %502 = vmatpush.msra.mxu2 %v1379_v18  ;;  %v547_v39 = vld [vmem:[%s2652_s5 + $0x60] sm:$0xff]  ;;  %v1373_v40 = vld [vmem:[%s2650_s3 + $0x118] sm:$0xff]  ;;  %v1372_v44 = vld [vmem:[%s2650_s3 + $0x110] sm:$0xff] }
  0x1a   : > { %444 = vmatpush.msra.mxu0 %v1363_v19  ;;  %552 = vmatpush.msra.mxu3 %v549_v31  ;;  %v1357_v41 = vld [vmem:[%s2650_s3 + $0x98] sm:$0xff]  ;;  %v1356_v45 = vld [vmem:[%s2650_s3 + $0x90] sm:$0xff]  ;;  %v1371_v48 = vld [vmem:[%s2650_s3 + $0x108] sm:$0xff] }
  0x1b   : > { %464 = vmatpush.msra.mxu1 %v413_v20  ;;  %503 = vmatpush.msra.mxu2 %v1378_v21  ;;  %v407_v42 = vld [vmem:[%s2650_s3 + $0x18] sm:$0xff]  ;;  %v406_v46 = vld [vmem:[%s2650_s3 + $0x10] sm:$0xff]  ;;  %v1355_v49 = vld [vmem:[%s2650_s3 + $0x88] sm:$0xff] }
  0x1c   : > { %445 = vmatpush.msra.mxu0 %v1362_v22  ;;  %553 = vmatpush.msra.mxu3 %v548_v35  ;;  %v546_v43 = vld [vmem:[%s2652_s5 + $0x58] sm:$0xff]  ;;  %v545_v47 = vld [vmem:[%s2652_s5 + $0x50] sm:$0xff]  ;;  %v405_v50 = vld [vmem:[%s2650_s3 + $0x8] sm:$0xff] }
  0x1d   : > { %465 = vmatpush.msra.mxu1 %v412_v23  ;;  %504 = vmatpush.msra.mxu2 %v1377_v24  ;;  %v1370_v51 = vld [vmem:[%s2650_s3 + $0x100] sm:$0xff]  ;;  %v544_v57 = vld [vmem:[%s2652_s5 + $0x48] sm:$0xff]  ;;  %v542_v59 = vld [vmem:[%s2652_s5 + $0x38] sm:$0xff] }
  0x1e   : > { %446 = vmatpush.msra.mxu0 %v1361_v25  ;;  %554 = vmatpush.msra.mxu3 %v547_v39  ;;  %v1354_v52 = vld [vmem:[%s2650_s3 + $0x80] sm:$0xff]  ;;  %v541_v60 = vld [vmem:[%s2652_s5 + $0x30] sm:$0xff]  ;;  %v540_v61 = vld [vmem:[%s2652_s5 + $0x28] sm:$0xff] }
  0x1f   : > { %466 = vmatpush.msra.mxu1 %v411_v26  ;;  %505 = vmatpush.msra.mxu2 %v1376_v27  ;;  %v478_v53 = vld [vmem:[%s393_s13 + $0x2] sm:$0xff]  ;;  %v538_v63 = vld [vmem:[%s2652_s5 + $0x18] sm:$0xff]  ;;  %v537_v0 = vld [vmem:[%s2652_s5 + $0x10] sm:$0xff] }
  0x20   : > { %447 = vmatpush.msra.mxu0 %v1360_v28  ;;  %555 = vmatpush.msra.mxu3 %v546_v43  ;;  %v404_v54 = vld [vmem:[%s2650_s3] sm:$0xff]  ;;  %v536_v1 = vld [vmem:[%s2652_s5 + $0x8] sm:$0xff]  ;;  %v1416_v3 = vld [vmem:[%s2653_s6 + $0x1f0] sm:$0xff] }
  0x21   : > { %467 = vmatpush.msra.mxu1 %v410_v29  ;;  %506 = vmatpush.msra.mxu2 %v1375_v32  ;;  %v420_v55 = vld [vmem:[%s393_s13 + $0x1] sm:$0xff]  ;;  %v1417_v4 = vld [vmem:[%s2653_s6 + $0x1f8] sm:$0xff]  ;;  %v1412_v7 = vld [vmem:[%s2653_s6 + $0x1d0] sm:$0xff] }
  0x22   : > { %448 = vmatpush.msra.mxu0 %v1359_v33  ;;  %556 = vmatpush.msra.mxu3 %v545_v47  ;;  %v403_v56 = vld [vmem:[%s393_s13] sm:$0xff]  ;;  %v1415_v6 = vld [vmem:[%s2653_s6 + $0x1e8] sm:$0xff]  ;;  %v1413_v8 = vld [vmem:[%s2653_s6 + $0x1d8] sm:$0xff]  ;;  %s1259_s13 = ssub.f32 1.0, %s402_s12 }
  0x23   : > { %468 = vmatpush.msra.mxu1 %v409_v34  ;;  %507 = vmatpush.msra.mxu2 %v1374_v36  ;;  %v543_v58 = vld [vmem:[%s2652_s5 + $0x40] sm:$0xff]  ;;  %v1411_v10 = vld [vmem:[%s2653_s6 + $0x1c8] sm:$0xff]  ;;  %v1408_v11 = vld [vmem:[%s2653_s6 + $0x1b0] sm:$0xff] }
  0x24   : > { %449 = vmatpush.msra.mxu0 %v1358_v37  ;;  %557 = vmatpush.msra.mxu3 %v544_v57  ;;  %v539_v62 = vld [vmem:[%s2652_s5 + $0x20] sm:$0xff]  ;;  %v1409_v12 = vld [vmem:[%s2653_s6 + $0x1b8] sm:$0xff]  ;;  %v1407_v16 = vld [vmem:[%s2653_s6 + $0x1a8] sm:$0xff] }
  0x25   : > { %469 = vmatpush.msra.mxu1 %v408_v38  ;;  %508 = vmatpush.msra.mxu2 %v1373_v40  ;;  %v535_v2 = vld [vmem:[%s2652_s5] sm:$0xff]  ;;  %v1405_v36 = vld [vmem:[%s2653_s6 + $0x198] sm:$0xff]  ;;  %v1403_v38 = vld [vmem:[%s2653_s6 + $0x188] sm:$0xff] }
  0x26   : > { %450 = vmatpush.msra.mxu0 %v1357_v41  ;;  %558 = vmatpush.msra.mxu3 %v543_v58  ;;  %v1414_v5 = vld [vmem:[%s2653_s6 + $0x1e0] sm:$0xff]  ;;  %v1401_v40 = vld [vmem:[%s2653_s6 + $0x178] sm:$0xff] }
  0x27   : > { %470 = vmatpush.msra.mxu1 %v407_v42  ;;  %509 = vmatpush.msra.mxu2 %v1372_v44  ;;  %v1410_v9 = vld [vmem:[%s2653_s6 + $0x1c0] sm:$0xff]  ;;  %v1399_v42 = vld [vmem:[%s2653_s6 + $0x168] sm:$0xff]  ;;  %v1397_v44 = vld [vmem:[%s2653_s6 + $0x158] sm:$0xff] }
  0x28   : > { %451 = vmatpush.msra.mxu0 %v1356_v45  ;;  %559 = vmatpush.msra.mxu3 %v542_v59  ;;  %v1406_v15 = vld [vmem:[%s2653_s6 + $0x1a0] sm:$0xff] }
  0x29   : > { %471 = vmatpush.msra.mxu1 %v406_v46  ;;  %510 = vmatpush.msra.mxu2 %v1371_v48  ;;  %v1467_v18 = vld [vmem:[%s2651_s4] ss:$0 sm:$0xff]  ;;  %v1395_v46 = vld [vmem:[%s2653_s6 + $0x148] sm:$0xff]  ;;  %v1393_v48 = vld [vmem:[%s2653_s6 + $0x138] sm:$0xff] }
  0x2a   : > { %452 = vmatpush.msra.mxu0 %v1355_v49  ;;  %560 = vmatpush.msra.mxu3 %v541_v60  ;;  %v1402_v37 = vld [vmem:[%s2653_s6 + $0x180] sm:$0xff] }
  0x2b   : > { %472 = vmatpush.msra.mxu1 %v405_v50  ;;  %511 = vmatpush.msra.mxu2 %v1370_v51  ;;  %v1398_v41 = vld [vmem:[%s2653_s6 + $0x160] sm:$0xff]  ;;  %v1391_v50 = vld [vmem:[%s2653_s6 + $0x128] sm:$0xff]  ;;  %v1388_v51 = vld [vmem:[%s2653_s6 + $0x110] sm:$0xff] }
  0x2c   : > { %453 = vmatpush.msra.mxu0 %v1354_v52  ;;  %512 = vmatmul.f32.vlgmr.msra.gmra.mxu2 %v478_v53  ;;  %v1394_v45 = vld [vmem:[%s2653_s6 + $0x140] sm:$0xff]  ;;  %v1389_v52 = vld [vmem:[%s2653_s6 + $0x118] sm:$0xff] }
  0x2d   : > { %473 = vmatpush.msra.mxu1 %v404_v54  ;;  %454 = vmatmul.f32.vlgmr.msra.gmra.mxu0 %v420_v55  ;;  %v1390_v49 = vld [vmem:[%s2653_s6 + $0x120] sm:$0xff]  ;;  %v1387_v54 = vld [vmem:[%s2653_s6 + $0x108] sm:$0xff]  ;;  %v643_v55 = vld [vmem:[%s2653_s6 + $0xf0] sm:$0xff] }
  0x2e   : > { %474 = vmatmul.f32.vlgmr.msra.gmra.mxu1 %v403_v56  ;;  %571 = vmatpush.msrb.mxu0 %v550_v30  ;;  %v1386_v53 = vld [vmem:[%s2653_s6 + $0x100] sm:$0xff]  ;;  %v644_v56 = vld [vmem:[%s2653_s6 + $0xf8] sm:$0xff] }
  0x2f   : > { %561 = vmatpush.msra.mxu3 %v540_v61  ;;  %679 = vmatpush.msrb.mxu1 %v1416_v3  ;;  %v637_v3 = vld [vmem:[%s2653_s6 + $0xc0] sm:$0xff] }
  0x30   : > { %572 = vmatpush.msrb.mxu0 %v549_v31  ;;  %699 = vmatpush.msrb.mxu2 %v1417_v4  ;;  %v638_v4 = vld [vmem:[%s2653_s6 + $0xc8] sm:$0xff] }
  0x31   : > { %562 = vmatpush.msra.mxu3 %v539_v62  ;;  %680 = vmatpush.msrb.mxu1 %v1414_v5  ;;  %v1442_v5 = vld [vmem:[%s2653_s6 + $0x2c0] sm:$0xff] }
  0x32   : > { %573 = vmatpush.msrb.mxu0 %v548_v35  ;;  %700 = vmatpush.msrb.mxu2 %v1415_v6  ;;  %v1404_v35 = vld [vmem:[%s2653_s6 + $0x190] sm:$0xff]  ;;  %v1443_v6 = vld [vmem:[%s2653_s6 + $0x2c8] sm:$0xff] }
  0x33   : > { %563 = vmatpush.msra.mxu3 %v538_v63  ;;  %681 = vmatpush.msrb.mxu1 %v1412_v7  ;;  %v635_v7 = vld [vmem:[%s2653_s6 + $0xb0] sm:$0xff] }
  0x34   : > { %574 = vmatpush.msrb.mxu0 %v547_v39  ;;  %701 = vmatpush.msrb.mxu2 %v1413_v8  ;;  %v1400_v39 = vld [vmem:[%s2653_s6 + $0x170] sm:$0xff]  ;;  %v636_v8 = vld [vmem:[%s2653_s6 + $0xb8] sm:$0xff] }
  0x35   : > { %564 = vmatpush.msra.mxu3 %v537_v0  ;;  %682 = vmatpush.msrb.mxu1 %v1410_v9  ;;  %v1440_v9 = vld [vmem:[%s2653_s6 + $0x2b0] sm:$0xff] }
  0x36   : > { %575 = vmatpush.msrb.mxu0 %v546_v43  ;;  %702 = vmatpush.msrb.mxu2 %v1411_v10  ;;  %v1396_v43 = vld [vmem:[%s2653_s6 + $0x150] sm:$0xff]  ;;  %v1441_v10 = vld [vmem:[%s2653_s6 + $0x2b8] sm:$0xff] }
  0x37   : > { %565 = vmatpush.msra.mxu3 %v536_v1  ;;  %683 = vmatpush.msrb.mxu1 %v1408_v11  ;;  %v633_v11 = vld [vmem:[%s2653_s6 + $0xa0] sm:$0xff] }
  0x38   : > { %576 = vmatpush.msrb.mxu0 %v545_v47  ;;  %703 = vmatpush.msrb.mxu2 %v1409_v12  ;;  %v1392_v47 = vld [vmem:[%s2653_s6 + $0x130] sm:$0xff]  ;;  %v634_v12 = vld [vmem:[%s2653_s6 + $0xa8] sm:$0xff] }
  0x39   : > { %566 = vmatpush.msra.mxu3 %v535_v2  ;;  %684 = vmatpush.msrb.mxu1 %v1406_v15  ;;  %v631_v15 = vld [vmem:[%s2653_s6 + $0x90] sm:$0xff] }
  0x3a   : > { %577 = vmatpush.msrb.mxu0 %v544_v57  ;;  %704 = vmatpush.msrb.mxu2 %v1407_v16  ;;  %v1448_v57 = vld [vmem:[%s2653_s6 + $0x2f0] sm:$0xff]  ;;  %v632_v16 = vld [vmem:[%s2653_s6 + $0x98] sm:$0xff] }
  0x3b   : > { %685 = vmatpush.msrb.mxu1 %v1404_v35  ;;  %719 = vmatpush.msrb.mxu3 %v643_v55  ;;  %v1429_v35 = vld [vmem:[%s2653_s6 + $0x258] sm:$0xff]  ;;  %v613_v55 = vld [vmem:[%s2653_s6] sm:$0xff] }
  0x3c   : > { %578 = vmatpush.msrb.mxu0 %v543_v58  ;;  %705 = vmatpush.msrb.mxu2 %v1405_v36  ;;  %v1449_v58 = vld [vmem:[%s2653_s6 + $0x2f8] sm:$0xff]  ;;  %v621_v36 = vld [vmem:[%s2653_s6 + $0x40] sm:$0xff] }
  0x3d   : > { %686 = vmatpush.msrb.mxu1 %v1402_v37  ;;  %v622_v37 = vld [vmem:[%s2653_s6 + $0x48] sm:$0xff] }
  0x3e   : > { %579 = vmatpush.msrb.mxu0 %v542_v59  ;;  %706 = vmatpush.msrb.mxu2 %v1403_v38  ;;  %v641_v59 = vld [vmem:[%s2653_s6 + $0xe0] sm:$0xff] }
  0x3f   : > { %687 = vmatpush.msrb.mxu1 %v1400_v39  ;;  %720 = vmatpush.msrb.mxu3 %v641_v59  ;;  %v1426_v38 = vld [vmem:[%s2653_s6 + $0x240] sm:$0xff]  ;;  %v1482_v39 = vmov 0.0  }
  0x40   : > { %580 = vmatpush.msrb.mxu0 %v541_v60  ;;  %707 = vmatpush.msrb.mxu2 %v1401_v40  ;;  %v642_v60 = vld [vmem:[%s2653_s6 + $0xe8] sm:$0xff]  ;;  %609 = vst [vmem:[#allocation2] sm:$0xff] %v1482_v39 }
  0x41   : > { %688 = vmatpush.msrb.mxu1 %v1398_v41  ;;  %v1427_v40 = vld [vmem:[%s2653_s6 + $0x248] sm:$0xff]  ;;  %610 = vst [vmem:[#allocation2 + $0x8] sm:$0x3] %v1482_v39  ;;  %v619_v41 = vld [vmem:[%s2653_s6 + $0x30] sm:$0xff]  ;;  %v2238_v39 = vld [vmem:[%s2655_s8 + $0xd8] sm:$0xff] }
  0x42   : > { %581 = vmatpush.msrb.mxu0 %v540_v61  ;;  %708 = vmatpush.msrb.mxu2 %v1399_v42  ;;  %v1446_v61 = vld [vmem:[%s2653_s6 + $0x2e0] sm:$0xff]  ;;  %v620_v42 = vld [vmem:[%s2653_s6 + $0x38] sm:$0xff] }
  0x43   : > { %689 = vmatpush.msrb.mxu1 %v1396_v43  ;;  %v617_v43 = vld [vmem:[%s2653_s6 + $0x20] sm:$0xff] }
  0x44   : > { %582 = vmatpush.msrb.mxu0 %v539_v62  ;;  %709 = vmatpush.msrb.mxu2 %v1397_v44  ;;  %v1447_v62 = vld [vmem:[%s2653_s6 + $0x2e8] sm:$0xff] }
  0x45   : > { %690 = vmatpush.msrb.mxu1 %v1394_v45  ;;  %v618_v45 = vld [vmem:[%s2653_s6 + $0x28] sm:$0xff] }
  0x46   : > { %583 = vmatpush.msrb.mxu0 %v538_v63  ;;  %710 = vmatpush.msrb.mxu2 %v1395_v46  ;;  %v639_v63 = vld [vmem:[%s2653_s6 + $0xd0] sm:$0xff] }
  0x47   : > { %691 = vmatpush.msrb.mxu1 %v1392_v47  ;;  %721 = vmatpush.msrb.mxu3 %v639_v63  ;;  %v615_v47 = vld [vmem:[%s2653_s6 + $0x10] sm:$0xff]  ;;  %v2073_v63 = vld [vmem:[%s2655_s8 + $0xe0] sm:$0xff] }
  0x48   : > { %584 = vmatpush.msrb.mxu0 %v537_v0  ;;  %711 = vmatpush.msrb.mxu2 %v1393_v48  ;;  %v640_v0 = vld [vmem:[%s2653_s6 + $0xd8] sm:$0xff] }
  0x49   : > { %692 = vmatpush.msrb.mxu1 %v1390_v49  ;;  %722 = vmatpush.msrb.mxu3 %v637_v3  ;;  %v616_v48 = vld [vmem:[%s2653_s6 + $0x18] sm:$0xff]  ;;  %v1424_v49 = vld [vmem:[%s2653_s6 + $0x230] sm:$0xff] }
  0x4a   : > { %585 = vmatpush.msrb.mxu0 %v536_v1  ;;  %712 = vmatpush.msrb.mxu2 %v1391_v50  ;;  %v1444_v1 = vld [vmem:[%s2653_s6 + $0x2d0] sm:$0xff] }
  0x4b   : > { %693 = vmatpush.msrb.mxu1 %v1388_v51  ;;  %723 = vmatpush.msrb.mxu3 %v635_v7  ;;  %v1425_v51 = vld [vmem:[%s2653_s6 + $0x238] sm:$0xff]  ;;  %v2108_v7 = vld [vmem:[%s2655_s8 + $0x1c0] sm:$0xff] }
  0x4c   : > { %586 = vmatpush.msrb.mxu0 %v535_v2  ;;  %713 = vmatpush.msrb.mxu2 %v1389_v52  ;;  %v1445_v2 = vld [vmem:[%s2653_s6 + $0x2d8] sm:$0xff]  ;;  %v1422_v52 = vld [vmem:[%s2653_s6 + $0x220] sm:$0xff] }
  0x4d   : > { %694 = vmatpush.msrb.mxu1 %v1386_v53  ;;  %724 = vmatpush.msrb.mxu3 %v633_v11  ;;  %v1423_v53 = vld [vmem:[%s2653_s6 + $0x228] sm:$0xff]  ;;  %v2125_v11 = vld [vmem:[%s2655_s8 + $0xa0] sm:$0xff] }
  0x4e   : > { %714 = vmatpush.msrb.mxu2 %v1387_v54  ;;  %739 = vmatpush.msra.mxu0 %v644_v56  ;;  %v614_v56 = vld [vmem:[%s2653_s6 + $0x8] sm:$0xff] }
  0x4f   : > { %793 = vmatpush.msra.mxu1 %v1448_v57  ;;  %725 = vmatpush.msrb.mxu3 %v631_v15  ;;  %v1420_v57 = vld [vmem:[%s2653_s6 + $0x210] sm:$0xff] }
  0x50   : > { %813 = vmatpush.msra.mxu2 %v1449_v58  ;;  %740 = vmatpush.msra.mxu0 %v642_v60  ;;  %v1421_v58 = vld [vmem:[%s2653_s6 + $0x218] sm:$0xff]  ;;  %v1418_v60 = vld [vmem:[%s2653_s6 + $0x200] sm:$0xff] }
  0x51   : > { %794 = vmatpush.msra.mxu1 %v1446_v61  ;;  %v1419_v61 = vld [vmem:[%s2653_s6 + $0x208] sm:$0xff] }
  0x52   : > { %814 = vmatpush.msra.mxu2 %v1447_v62  ;;  %741 = vmatpush.msra.mxu0 %v640_v0  ;;  %v2068_v62 = vld [vmem:[%s2655_s8 + $0xf0] sm:$0xff] }
  0x53   : > { %795 = vmatpush.msra.mxu1 %v1444_v1  ;;  %v2079_v0 = vld [vmem:[%s2655_s8 + $0x1f0] sm:$0xff] }
  0x54   : > { %815 = vmatpush.msra.mxu2 %v1445_v2  ;;  %742 = vmatpush.msra.mxu0 %v638_v4  ;;  %v2084_v1 = vld [vmem:[%s2655_s8 + $0xd0] sm:$0xff]  ;;  %v2090_v2 = vld [vmem:[%s2655_s8 + $0x1e0] sm:$0xff] }
  0x55   : > { %796 = vmatpush.msra.mxu1 %v1442_v5  ;;  %v2096_v4 = vld [vmem:[%s2655_s8 + $0xc0] sm:$0xff]  ;;  %v2102_v5 = vld [vmem:[%s2655_s8 + $0x1d0] sm:$0xff] }
  0x56   : > { %816 = vmatpush.msra.mxu2 %v1443_v6  ;;  %743 = vmatpush.msra.mxu0 %v636_v8  ;;  %v2113_v8 = vld [vmem:[%s2655_s8 + $0xb0] sm:$0xff] }
  0x57   : > { %797 = vmatpush.msra.mxu1 %v1440_v9 }
  0x58   : > { %817 = vmatpush.msra.mxu2 %v1441_v10  ;;  %744 = vmatpush.msra.mxu0 %v634_v12  ;;  %v2120_v10 = vld [vmem:[%s2655_s8 + $0x1b0] sm:$0xff] }
  0x5a   : > { %745 = vmatpush.msra.mxu0 %v632_v16  ;;  %v2144_v16 = vld [vmem:[%s2655_s8 + $0x190] sm:$0xff] }
  0xaa   : > { %v455_v13 = vpop.f32.mrf.mxu0 }
  0xab   : > { %v475_v14 = vpop.f32.mrf.mxu1 }
  0xac   : > { %v476_v17 = vadd.f32 %v475_v14, %v455_v13  ;;  %v1438_v13 = vld [vmem:[%s2653_s6 + $0x2a0] sm:$0xff]  ;;  %v1439_v14 = vld [vmem:[%s2653_s6 + $0x2a8] sm:$0xff] }
  0xad   : > { %798 = vmatpush.msra.mxu1 %v1438_v13  ;;  %818 = vmatpush.msra.mxu2 %v1439_v14  ;;  %v2132_v13 = vld [vmem:[%s2655_s8 + $0x1a0] sm:$0xff]  ;;  %v2137_v14 = vld [vmem:[%s2655_s8 + $0x90] sm:$0xff] }
  0xaf   : > { %v513_v19 = vpop.f32.mrf.mxu2 }
  0xb0   : > { %v516_v20 = vadd.f32 %v513_v19, %v476_v17  ;;  %v1436_v17 = vld [vmem:[%s2653_s6 + $0x290] sm:$0xff]  ;;  %v629_v19 = vld [vmem:[%s2653_s6 + $0x80] sm:$0xff] }
  0xb1   : > { %799 = vmatpush.msra.mxu1 %v1436_v17  ;;  %726 = vmatpush.msrb.mxu3 %v629_v19 }
  0xb2   : > { %v1803_v21 = vadd.f32 %v1467_v18, %v516_v20  ;;  %v1437_v18 = vld [vmem:[%s2653_s6 + $0x298] sm:$0xff]  ;;  %v630_v20 = vld [vmem:[%s2653_s6 + $0x88] sm:$0xff] }
  0xb3   : > { %819 = vmatpush.msra.mxu2 %v1437_v18  ;;  %746 = vmatpush.msra.mxu0 %v630_v20  ;;  %v2150_v18 = vld [vmem:[%s2655_s8 + $0x80] sm:$0xff] }
  0xb4   : > { %v522_v22 = vrot.slane %v1803_v21, 4  ;;  %v528_v23 = vmul.f32 %v1803_v21, %v1803_v21  ;;  %v2157_v20 = vld [vmem:[%s2655_s8 + $0x180] sm:$0xff] }
  0xb6   : > { %v523_v24 = vadd.f32 %v522_v22, %v1803_v21  ;;  %v529_v25 = vrot.slane %v528_v23, 4  ;;  %v1434_v22 = vld [vmem:[%s2653_s6 + $0x280] sm:$0xff] }
  0xb7   : > { %800 = vmatpush.msra.mxu1 %v1434_v22  ;;  %v2162_v22 = vld [vmem:[%s2655_s8 + $0x70] sm:$0xff] }
  0xb8   : > { %v524_v26 = vrot.slane %v523_v24, 2  ;;  %v530_v27 = vadd.f32 %v529_v25, %v528_v23  ;;  %v1435_v23 = vld [vmem:[%s2653_s6 + $0x288] sm:$0xff]  ;;  %v628_v25 = vld [vmem:[%s2653_s6 + $0x78] sm:$0xff] }
  0xb9   : > { %820 = vmatpush.msra.mxu2 %v1435_v23  ;;  %747 = vmatpush.msra.mxu0 %v628_v25 }
  0xba   : > { %v525_v28 = vadd.f32 %v524_v26, %v523_v24  ;;  %v531_v29 = vrot.slane %v530_v27, 2  ;;  %v627_v24 = vld [vmem:[%s2653_s6 + $0x70] sm:$0xff] }
  0xbb   : > { %v1432_v26 = vld [vmem:[%s2653_s6 + $0x270] sm:$0xff]  ;;  %727 = vmatpush.msrb.mxu3 %v627_v24 }
  0xbc   : > { %v526_v30 = vrot.slane %v525_v28, 1  ;;  %v532_v31 = vadd.f32 %v531_v29, %v530_v27  ;;  %v1433_v27 = vld [vmem:[%s2653_s6 + $0x278] sm:$0xff]  ;;  %v626_v29 = vld [vmem:[%s2653_s6 + $0x68] sm:$0xff]  ;;  %801 = vmatpush.msra.mxu1 %v1432_v26  ;;  %v2169_v24 = vld [vmem:[%s2655_s8 + $0x170] sm:$0xff] }
  0xbd   : > { %821 = vmatpush.msra.mxu2 %v1433_v27  ;;  %748 = vmatpush.msra.mxu0 %v626_v29  ;;  %v2175_v27 = vld [vmem:[%s2655_s8 + $0x60] sm:$0xff] }
  0xbe   : > { %v527_v32 = vadd.f32 %v526_v30, %v525_v28  ;;  %v533_v33 = vrot.slane %v532_v31, 1  ;;  %v625_v28 = vld [vmem:[%s2653_s6 + $0x60] sm:$0xff] }
  0xbf   : > { %v1430_v30 = vld [vmem:[%s2653_s6 + $0x260] sm:$0xff]  ;;  %728 = vmatpush.msrb.mxu3 %v625_v28 }
  0xc0   : > { %567 = vmatmul.f32.vlgmr.msra.gmra.mxu3 %v527_v32  ;;  %v534_v34 = vadd.f32 %v533_v33, %v532_v31  ;;  %v1431_v31 = vld [vmem:[%s2653_s6 + $0x268] sm:$0xff]  ;;  %v623_v32 = vld [vmem:[%s2653_s6 + $0x50] sm:$0xff]  ;;  %v624_v33 = vld [vmem:[%s2653_s6 + $0x58] sm:$0xff]  ;;  %802 = vmatpush.msra.mxu1 %v1430_v30 }
  0xc1   : > { %822 = vmatpush.msra.mxu2 %v1431_v31  ;;  %729 = vmatpush.msrb.mxu3 %v623_v32  ;;  %v2182_v28 = vld [vmem:[%s2655_s8 + $0x160] sm:$0xff]  ;;  %v2194_v31 = vld [vmem:[%s2655_s8 + $0xf8] sm:$0xff] }
  0xc2   : > { %587 = vmatmul.f32.vlgmr.msrb.gmra.mxu0 %v534_v34  ;;  %v1428_v34 = vld [vmem:[%s2653_s6 + $0x250] sm:$0xff]  ;;  %v2199_v32 = vld [vmem:[%s2655_s8 + $0x1f8] sm:$0xff] }
  0xc3   : > { %749 = vmatpush.msra.mxu0 %v624_v33  ;;  %803 = vmatpush.msra.mxu1 %v1428_v34  ;;  %v2206_v33 = vld [vmem:[%s2655_s8 + $0x40] sm:$0xff]  ;;  %v2211_v34 = vld [vmem:[%s2655_s8 + $0x150] sm:$0xff] }
  0xc4   : > { %823 = vmatpush.msra.mxu2 %v1429_v35  ;;  %730 = vmatpush.msrb.mxu3 %v621_v36  ;;  %v2216_v35 = vld [vmem:[%s2655_s8 + $0xe8] sm:$0xff] }
  0xc5   : > { %750 = vmatpush.msra.mxu0 %v622_v37  ;;  %804 = vmatpush.msra.mxu1 %v1426_v38  ;;  %v2221_v36 = vld [vmem:[%s2655_s8 + $0x1e8] sm:$0xff]  ;;  %v2228_v37 = vld [vmem:[%s2655_s8 + $0x30] sm:$0xff]  ;;  %v2233_v38 = vld [vmem:[%s2655_s8 + $0x140] sm:$0xff] }
  0xc6   : > { %824 = vmatpush.msra.mxu2 %v1427_v40  ;;  %731 = vmatpush.msrb.mxu3 %v619_v41  ;;  %v2243_v40 = vld [vmem:[%s2655_s8 + $0x1d8] sm:$0xff]  ;;  %v2252_v41 = vld [vmem:[%s2655_s8 + $0x20] sm:$0xff] }
  0xc7   : > { %751 = vmatpush.msra.mxu0 %v620_v42  ;;  %805 = vmatpush.msra.mxu1 %v1424_v49  ;;  %v2257_v42 = vld [vmem:[%s2655_s8 + $0xc8] sm:$0xff] }
  0xc8   : > { %732 = vmatpush.msrb.mxu3 %v617_v43  ;;  %825 = vmatpush.msra.mxu2 %v1425_v51  ;;  %v2262_v43 = vld [vmem:[%s2655_s8 + $0x1c8] sm:$0xff]  ;;  %v2301_v51 = vld [vmem:[%s2655_s8 + $0x98] sm:$0xff] }
  0xc9   : > { %752 = vmatpush.msra.mxu0 %v618_v45  ;;  %806 = vmatpush.msra.mxu1 %v1422_v52  ;;  %v2289_v49 = vld [vmem:[%s2655_s8 + $0xa8] sm:$0xff]  ;;  %v2306_v52 = vld [vmem:[%s2655_s8 + $0x198] sm:$0xff] }
  0xca   : > { %733 = vmatpush.msrb.mxu3 %v615_v47  ;;  %826 = vmatpush.msra.mxu2 %v1423_v53  ;;  %v2279_v47 = vld [vmem:[%s2655_s8 + $0x1b8] sm:$0xff]  ;;  %v2314_v53 = vld [vmem:[%s2655_s8 + $0x88] sm:$0xff] }
  0xcb   : > { %753 = vmatpush.msra.mxu0 %v616_v48  ;;  %807 = vmatpush.msra.mxu1 %v1420_v57  ;;  %v2284_v48 = vld [vmem:[%s2655_s8 + $0x10] sm:$0xff]  ;;  %v2338_v57 = vld [vmem:[%s2655_s8 + $0x68] sm:$0xff] }
  0xcc   : > { %734 = vmatpush.msrb.mxu3 %v613_v55  ;;  %827 = vmatpush.msra.mxu2 %v1421_v58  ;;  %v2326_v55 = vld [vmem:[%s2655_s8 + $0x78] sm:$0xff]  ;;  %v2343_v58 = vld [vmem:[%s2655_s8 + $0x168] sm:$0xff] }
  0xcd   : > { %754 = vmatpush.msra.mxu0 %v614_v56  ;;  %808 = vmatpush.msra.mxu1 %v1418_v60  ;;  %v2331_v56 = vld [vmem:[%s2655_s8 + $0x178] sm:$0xff] }
  0xce   : > { %828 = vmatpush.msra.mxu2 %v1419_v61  ;;  %933 = vmatpush.msra.mxu3 %v2068_v62  ;;  %v2355_v60 = vld [vmem:[%s2655_s8 + $0x158] sm:$0xff]  ;;  %v2362_v61 = vld [vmem:[%s2655_s8 + $0x48] sm:$0xff] }
  0xcf   : > { %953 = vmatpush.msrb.mxu0 %v2079_v0 }
  0xd0   : > { %934 = vmatpush.msra.mxu3 %v2073_v63 }
  0xd1   : > { %954 = vmatpush.msrb.mxu0 %v2090_v2 }
  0xd2   : > { %935 = vmatpush.msra.mxu3 %v2084_v1 }
  0xd3   : > { %955 = vmatpush.msrb.mxu0 %v2102_v5 }
  0xd4   : > { %936 = vmatpush.msra.mxu3 %v2096_v4 }
  0xd5   : > { %956 = vmatpush.msrb.mxu0 %v2108_v7 }
  0xd6   : > { %937 = vmatpush.msra.mxu3 %v2113_v8 }
  0xd7   : > { %957 = vmatpush.msrb.mxu0 %v2120_v10 }
  0xd8   : > { %938 = vmatpush.msra.mxu3 %v2125_v11 }
  0xd9   : > { %958 = vmatpush.msrb.mxu0 %v2132_v13 }
  0xda   : > { %939 = vmatpush.msra.mxu3 %v2137_v14 }
  0xdb   : > { %959 = vmatpush.msrb.mxu0 %v2144_v16 }
  0xdc   : > { %940 = vmatpush.msra.mxu3 %v2150_v18 }
  0xdd   : > { %960 = vmatpush.msrb.mxu0 %v2157_v20 }
  0xde   : > { %941 = vmatpush.msra.mxu3 %v2162_v22 }
  0xdf   : > { %961 = vmatpush.msrb.mxu0 %v2169_v24 }
  0xe0   : > { %942 = vmatpush.msra.mxu3 %v2175_v27 }
  0xe1   : > { %962 = vmatpush.msrb.mxu0 %v2182_v28 }
  0xe3   : > { %963 = vmatpush.msrb.mxu0 %v2211_v34 }
  0xe5   : > { %964 = vmatpush.msrb.mxu0 %v2233_v38 }
 0x13f   : > { %v588_v50 = vpop.f32.mrf.mxu0 }
 0x143   : > { %v2022_v44 = vpop.f32.mrf.mxu3 }
 0x144   : > { %v591_v46 = vmul.f32 %v2022_v44, %v2022_v44  ;;  %v593_v17 = vperm.slane %v2022_v44, 0  ;;  %v2271_v44 = vld [vmem:[%s2655_s8 + $0xb8] sm:$0xff] }
 0x146   : > { %v592_v54 = vsub.f32 %v588_v50, %v591_v46  ;;  %v594_v25 = vsub.f32 %v1803_v21, %v593_v17  ;;  %v2187_v21 = vld [vmem:[%s2655_s8 + $0x50] sm:$0xff]  ;;  %v2294_v50 = vld [vmem:[%s2655_s8 + $0x1a8] sm:$0xff] }
 0x147   : > { %943 = vmatpush.msra.mxu3 %v2187_v21  ;;  %v2399_v17 = vld [vmem:[%s2655_s8 + $0x130] sm:$0xff] }
 0x148   : > { %v595_v59 = vadd.f32 1e-05, %v592_v54  ;;  %v2319_v54 = vld [vmem:[%s2655_s8 + $0x188] sm:$0xff]  ;;  %965 = vmatpush.msrb.mxu0 %v2399_v17 }
 0x149   : > { %944 = vmatpush.msra.mxu3 %v2206_v33 }
 0x14a   : > { %1468 = vrsqrt.f32 %v595_v59  ;;  %vm602_vm1 = vweird.f32 %v595_v59 }
 0x14b   : > { %945 = vmatpush.msra.mxu3 %v2228_v37 }
 0x14d   : > { %946 = vmatpush.msra.mxu3 %v2252_v41 }
 0x14f   : > { %947 = vmatpush.msra.mxu3 %v2284_v48 }
 0x150   : > { %v1469_v3 = vpop.eup %1468 }
 0x151   : > { %v597_v6 = vmul.f32 %v1469_v3, %v595_v59  ;;  %vm603_vm0 = vweird.f32 %v1469_v3  ;;  %v2350_v59 = vld [vmem:[%s2655_s8 + $0x58] sm:$0xff] }
 0x152   : > { %vm604_vm2 = vmor %vm602_vm1, %vm603_vm0 }
 0x153   : > { %v598_v9 = vmul.f32 %v1469_v3, %v597_v6  ;;  %v2374_v6 = vld [vmem:[%s2655_s8 + $0x38] sm:$0xff] }
 0x155   : > { %v599_v12 = vmul.f32 0.5, %v598_v9  ;;  %v2381_v9 = vld [vmem:[%s2655_s8 + $0x28] sm:$0xff] }
 0x157   : > { %v600_v15 = vsub.f32 1.5, %v599_v12  ;;  %v2387_v12 = vld [vmem:[%s2655_s8 + $0x18] sm:$0xff] }
 0x159   : > { %v601_v19 = vmul.f32 %v1469_v3, %v600_v15  ;;  %v2394_v15 = vld [vmem:[%s2655_s8] sm:$0xff] }
 0x15a   : > { %948 = vmatpush.msra.mxu3 %v2394_v15 }
 0x15b   : > { %v605_v23 = vsel %vm604_vm2, %v1469_v3, %v601_v19  ;;  %v2367_v3 = vld [vmem:[%s2655_s8 + $0x148] sm:$0xff]  ;;  %v2404_v19 = vld [vmem:[%s2655_s8 + $0x138] sm:$0xff] }
 0x15c   : > { %v606_v26 = vperm.slane %v605_v23, 0  ;;  %v2413_v23 = vld [vmem:[%s2655_s8 + $0x120] sm:$0xff] }
 0x15d   : > { %966 = vmatpush.msrb.mxu0 %v2413_v23 }
 0x15e   : > { %v607_v29 = vmul.f32 %v606_v26, %v594_v25  ;;  %v2418_v25 = vld [vmem:[%s2655_s8 + $0x128] sm:$0xff]  ;;  %v2431_v26 = vld [vmem:[%s2655_s8 + $0x118] sm:$0xff] }
 0x160   : > { %v608_v30 = vmax.f32 %v607_v29, 0.0  ;;  %v2444_v29 = vld [vmem:[%s2655_s8 + $0x108] sm:$0xff] }
 0x162   : > { %611 = vst [vmem:[#allocation2 + $0x1] sm:$0xff] %v608_v30  ;;  %695 = vmatmul.f32.vlgmr.msrb.gmra.mxu1 %v608_v30  ;;  %715 = vmatmul.f32.vlgmr.msrb.gmra.mxu2 %v608_v30  ;;  %v2449_v30 = vld [vmem:[%s2655_s8 + $0x8] sm:$0xff] }
 0x163   : > { %973 = vmatpush.msrb.mxu1 %v2194_v31  ;;  %993 = vmatpush.msrb.mxu2 %v2199_v32 }
 0x165   : > { %974 = vmatpush.msrb.mxu1 %v2216_v35  ;;  %994 = vmatpush.msrb.mxu2 %v2221_v36 }
 0x167   : > { %975 = vmatpush.msrb.mxu1 %v2238_v39  ;;  %995 = vmatpush.msrb.mxu2 %v2243_v40 }
 0x169   : > { %v612_v45 = vld [vmem:[#allocation2] sm:$0xff]  ;;  %976 = vmatpush.msrb.mxu1 %v2257_v42  ;;  %996 = vmatpush.msrb.mxu2 %v2262_v43 }
 0x16a   : > { %v759_v46 = vld [vmem:[#allocation2 + $0x2] sm:$0xff]  ;;  %735 = vmatmul.f32.vlgmr.msrb.gmra.mxu3 %v612_v45  ;;  %755 = vmatmul.f32.vlgmr.msra.gmra.mxu0 %v612_v45 }
 0x16b   : > { %809 = vmatmul.f32.vlgmr.msra.gmra.mxu1 %v759_v46  ;;  %829 = vmatmul.f32.vlgmr.msra.gmra.mxu2 %v759_v46 }
 0x16c   : > { %977 = vmatpush.msrb.mxu1 %v2271_v44  ;;  %997 = vmatpush.msrb.mxu2 %v2279_v47 }
 0x16d   : > { %1013 = vmatpush.msrb.mxu3 %v2068_v62  ;;  %v2426_v62 = vld [vmem:[%s2655_s8 + $0x110] sm:$0xff] }
 0x16e   : > { %978 = vmatpush.msrb.mxu1 %v2289_v49  ;;  %998 = vmatpush.msrb.mxu2 %v2294_v50 }
 0x16f   : > { %1014 = vmatpush.msrb.mxu3 %v2073_v63  ;;  %967 = vmatpush.msrb.mxu0 %v2426_v62  ;;  %v2439_v63 = vld [vmem:[%s2655_s8 + $0x100] sm:$0xff] }
 0x170   : > { %979 = vmatpush.msrb.mxu1 %v2301_v51  ;;  %999 = vmatpush.msrb.mxu2 %v2306_v52 }
 0x171   : > { %1015 = vmatpush.msrb.mxu3 %v2084_v1  ;;  %968 = vmatpush.msrb.mxu0 %v2439_v63 }
 0x172   : > { %980 = vmatpush.msrb.mxu1 %v2314_v53  ;;  %1000 = vmatpush.msrb.mxu2 %v2319_v54 }
 0x173   : > { %1016 = vmatpush.msrb.mxu3 %v2096_v4  ;;  %1033 = vmatpush.msra.mxu0 %v2079_v0  ;;  %v835_v4 = vld [vmem:[%s2654_s7] sm:$0x3] }
 0x174   : > { %981 = vmatpush.msrb.mxu1 %v2326_v55  ;;  %1001 = vmatpush.msrb.mxu2 %v2331_v56 }
 0x175   : > { %1017 = vmatpush.msrb.mxu3 %v2113_v8  ;;  %1034 = vmatpush.msra.mxu0 %v2090_v2  ;;  %v838_v8 = vperm.slane %v835_v4, 1 }
 0x176   : > { %982 = vmatpush.msrb.mxu1 %v2338_v57  ;;  %1002 = vmatpush.msrb.mxu2 %v2343_v58 }
 0x177   : > { %1018 = vmatpush.msrb.mxu3 %v2125_v11  ;;  %1035 = vmatpush.msra.mxu0 %v2102_v5  ;;  %v837_v11 = vperm.slane %v835_v4, 0  ;;  %v1153_v4 = vld [vmem:[%s2656_s9 + $0xc8] sm:$0xff] }
 0x178   : > { %983 = vmatpush.msrb.mxu1 %v2350_v59  ;;  %1003 = vmatpush.msrb.mxu2 %v2355_v60 }
 0x179   : > { %1019 = vmatpush.msrb.mxu3 %v2137_v14  ;;  %1036 = vmatpush.msra.mxu0 %v2108_v7 }
 0x17a   : > { %984 = vmatpush.msrb.mxu1 %v2362_v61  ;;  %1004 = vmatpush.msrb.mxu2 %v2367_v3 }
 0x17b   : > { %1020 = vmatpush.msrb.mxu3 %v2150_v18  ;;  %1037 = vmatpush.msra.mxu0 %v2120_v10 }
 0x17c   : > { %985 = vmatpush.msrb.mxu1 %v2374_v6  ;;  %1005 = vmatpush.msrb.mxu2 %v2404_v19 }
 0x17d   : > { %1021 = vmatpush.msrb.mxu3 %v2162_v22  ;;  %1038 = vmatpush.msra.mxu0 %v2132_v13 }
 0x17e   : > { %986 = vmatpush.msrb.mxu1 %v2381_v9  ;;  %1006 = vmatpush.msrb.mxu2 %v2418_v25 }
 0x17f   : > { %1022 = vmatpush.msrb.mxu3 %v2175_v27  ;;  %1039 = vmatpush.msra.mxu0 %v2144_v16 }
 0x180   : > { %987 = vmatpush.msrb.mxu1 %v2387_v12  ;;  %1007 = vmatpush.msrb.mxu2 %v2431_v26 }
 0x181   : > { %1023 = vmatpush.msrb.mxu3 %v2187_v21  ;;  %1040 = vmatpush.msra.mxu0 %v2157_v20 }
 0x182   : > { %988 = vmatpush.msrb.mxu1 %v2449_v30  ;;  %1008 = vmatpush.msrb.mxu2 %v2444_v29 }
 0x183   : > { %1024 = vmatpush.msrb.mxu3 %v2206_v33  ;;  %1041 = vmatpush.msra.mxu0 %v2169_v24 }
 0x184   : > { %1053 = vmatpush.msra.mxu1 %v2194_v31  ;;  %1073 = vmatpush.msra.mxu2 %v2199_v32 }
 0x185   : > { %1025 = vmatpush.msrb.mxu3 %v2228_v37  ;;  %1042 = vmatpush.msra.mxu0 %v2182_v28 }
 0x186   : > { %1054 = vmatpush.msra.mxu1 %v2216_v35  ;;  %1074 = vmatpush.msra.mxu2 %v2221_v36 }
 0x187   : > { %1026 = vmatpush.msrb.mxu3 %v2252_v41  ;;  %1043 = vmatpush.msra.mxu0 %v2211_v34 }
 0x188   : > { %1055 = vmatpush.msra.mxu1 %v2238_v39  ;;  %1075 = vmatpush.msra.mxu2 %v2243_v40 }
 0x189   : > { %1027 = vmatpush.msrb.mxu3 %v2284_v48  ;;  %1044 = vmatpush.msra.mxu0 %v2233_v38 }
 0x18a   : > { %1056 = vmatpush.msra.mxu1 %v2257_v42  ;;  %1076 = vmatpush.msra.mxu2 %v2262_v43 }
 0x18b   : > { %1028 = vmatpush.msrb.mxu3 %v2394_v15  ;;  %1045 = vmatpush.msra.mxu0 %v2399_v17  ;;  %v1142_v15 = vld [vmem:[%s2656_s9 + $0x70] sm:$0xff]  ;;  %v1143_v17 = vld [vmem:[%s2656_s9 + $0x78] sm:$0xff] }
 0x18c   : > { %1057 = vmatpush.msra.mxu1 %v2271_v44  ;;  %1077 = vmatpush.msra.mxu2 %v2279_v47 }
 0x18d   : > { %1046 = vmatpush.msra.mxu0 %v2413_v23  ;;  %v1138_v23 = vld [vmem:[%s2656_s9 + $0x50] sm:$0xff] }
 0x18e   : > { %1058 = vmatpush.msra.mxu1 %v2289_v49  ;;  %1078 = vmatpush.msra.mxu2 %v2294_v50  ;;  %v1156_v49 = vld [vmem:[%s2656_s9 + $0xe0] sm:$0xff]  ;;  %v1158_v50 = vld [vmem:[%s2656_s9 + $0xf0] sm:$0xff] }
 0x18f   : > { %1047 = vmatpush.msra.mxu0 %v2426_v62  ;;  %v1132_v62 = vld [vmem:[%s2656_s9 + $0x20] sm:$0xff] }
 0x190   : > { %1059 = vmatpush.msra.mxu1 %v2301_v51  ;;  %1079 = vmatpush.msra.mxu2 %v2306_v52  ;;  %v1159_v51 = vld [vmem:[%s2656_s9 + $0xf8] sm:$0xff]  ;;  %v1152_v52 = vld [vmem:[%s2656_s9 + $0xc0] sm:$0xff] }
 0x191   : > { %1048 = vmatpush.msra.mxu0 %v2439_v63  ;;  %v1135_v63 = vld [vmem:[%s2656_s9 + $0x38] sm:$0xff] }
 0x192   : > { %1060 = vmatpush.msra.mxu1 %v2314_v53  ;;  %1080 = vmatpush.msra.mxu2 %v2319_v54  ;;  %v1154_v53 = vld [vmem:[%s2656_s9 + $0xd0] sm:$0xff] }
 0x194   : > { %1061 = vmatpush.msra.mxu1 %v2326_v55  ;;  %1081 = vmatpush.msra.mxu2 %v2331_v56  ;;  %v1155_v55 = vld [vmem:[%s2656_s9 + $0xd8] sm:$0xff] }
 0x196   : > { %1062 = vmatpush.msra.mxu1 %v2338_v57  ;;  %1082 = vmatpush.msra.mxu2 %v2343_v58  ;;  %v1148_v57 = vld [vmem:[%s2656_s9 + $0xa0] sm:$0xff]  ;;  %v1150_v58 = vld [vmem:[%s2656_s9 + $0xb0] sm:$0xff] }
 0x198   : > { %1063 = vmatpush.msra.mxu1 %v2350_v59  ;;  %1083 = vmatpush.msra.mxu2 %v2355_v60  ;;  %v1151_v59 = vld [vmem:[%s2656_s9 + $0xb8] sm:$0xff] }
 0x19a   : > { %1064 = vmatpush.msra.mxu1 %v2362_v61  ;;  %1084 = vmatpush.msra.mxu2 %v2367_v3  ;;  %v1144_v3 = vld [vmem:[%s2656_s9 + $0x80] sm:$0xff] }
 0x19c   : > { %1065 = vmatpush.msra.mxu1 %v2374_v6  ;;  %1085 = vmatpush.msra.mxu2 %v2404_v19  ;;  %v1146_v6 = vld [vmem:[%s2656_s9 + $0x90] sm:$0xff]  ;;  %v1136_v19 = vld [vmem:[%s2656_s9 + $0x40] sm:$0xff] }
 0x19e   : > { %1066 = vmatpush.msra.mxu1 %v2381_v9  ;;  %1086 = vmatpush.msra.mxu2 %v2418_v25  ;;  %v1147_v9 = vld [vmem:[%s2656_s9 + $0x98] sm:$0xff] }
 0x19f   : > { %v1139_v25 = vld [vmem:[%s2656_s9 + $0x58] sm:$0xff] }
 0x1a0   : > { %1067 = vmatpush.msra.mxu1 %v2387_v12  ;;  %1087 = vmatpush.msra.mxu2 %v2431_v26  ;;  %v1140_v12 = vld [vmem:[%s2656_s9 + $0x60] sm:$0xff]  ;;  %v1134_v26 = vld [vmem:[%s2656_s9 + $0x30] sm:$0xff] }
 0x1a2   : > { %1068 = vmatpush.msra.mxu1 %v2449_v30  ;;  %1088 = vmatpush.msra.mxu2 %v2444_v29  ;;  %v1128_v29 = vld [vmem:[%s2656_s9] sm:$0xff]  ;;  %v1130_v30 = vld [vmem:[%s2656_s9 + $0x10] sm:$0xff] }
 0x1df   : > { %v696_v0 = vpop.f32.mrf.mxu1 }
 0x1e5   : > { %v716_v1 = vpop.f32.mrf.mxu2 }
 0x1e7   : > { %v756_v2 = vpop.f32.mrf.mxu0 }
 0x1e8   : > { %v757_v5 = vadd.f32 %v756_v2, %v716_v1  ;;  %v810_v14 = vpop.f32.mrf.mxu1  ;;  %v1127_v1 = vld [vmem:[%s396_s0] sm:$0x1]  ;;  %v1131_v2 = vld [vmem:[%s2656_s9 + $0x18] sm:$0xff] }
 0x1ed   : > { %v736_v7 = vpop.f32.mrf.mxu3 }
 0x1ee   : > { %v737_v10 = vadd.f32 %v736_v7, %v696_v0  ;;  %v830_v13 = vpop.f32.mrf.mxu2  ;;  %v1157_v0 = vld [vmem:[%s2656_s9 + $0xe8] sm:$0xff] }
 0x1ef   : > { %v834_v16 = vadd.f32 %v830_v13, %v757_v5  ;;  %v1149_v5 = vld [vmem:[%s2656_s9 + $0xa8] sm:$0xff] }
 0x1f0   : > { %v833_v18 = vadd.f32 %v810_v14, %v737_v10  ;;  %v1145_v7 = vld [vmem:[%s2656_s9 + $0x88] sm:$0xff] }
 0x1f1   : > { %v2518_v20 = vadd.f32 %v838_v8, %v834_v16  ;;  %v1141_v8 = vld [vmem:[%s2656_s9 + $0x68] sm:$0xff] }
 0x1f2   : > { %v2520_v22 = vadd.f32 %v837_v11, %v833_v18  ;;  %v1137_v10 = vld [vmem:[%s2656_s9 + $0x48] sm:$0xff] }
 0x1f3   : > { %v849_v24 = vrot.slane %v2518_v20, 4  ;;  %v856_v27 = vmul.f32 %v2518_v20, %v2518_v20  ;;  %v1133_v11 = vld [vmem:[%s2656_s9 + $0x28] sm:$0xff] }
 0x1f4   : > { %v843_v28 = vrot.slane %v2520_v22, 4  ;;  %v855_v21 = vmul.f32 %v2520_v22, %v2520_v22  ;;  %v1129_v13 = vld [vmem:[%s2656_s9 + $0x8] sm:$0xff] }
 0x1f5   : > { %v850_v31 = vadd.f32 %v849_v24, %v2518_v20  ;;  %v863_v32 = vrot.slane %v856_v27, 4 }
 0x1f6   : > { %v844_v33 = vadd.f32 %v843_v28, %v2520_v22  ;;  %v857_v34 = vrot.slane %v855_v21, 4 }
 0x1f7   : > { %v851_v35 = vrot.slane %v850_v31, 2  ;;  %v864_v36 = vadd.f32 %v863_v32, %v856_v27 }
 0x1f8   : > { %v845_v37 = vrot.slane %v844_v33, 2  ;;  %v858_v38 = vadd.f32 %v857_v34, %v855_v21 }
 0x1f9   : > { %v852_v39 = vadd.f32 %v851_v35, %v850_v31  ;;  %v865_v40 = vrot.slane %v864_v36, 2 }
 0x1fa   : > { %v846_v41 = vadd.f32 %v845_v37, %v844_v33  ;;  %v859_v42 = vrot.slane %v858_v38, 2 }
 0x1fb   : > { %v853_v43 = vrot.slane %v852_v39, 1  ;;  %v866_v46 = vadd.f32 %v865_v40, %v864_v36 }
 0x1fc   : > { %v847_v44 = vrot.slane %v846_v41, 1  ;;  %v860_v48 = vadd.f32 %v859_v42, %v858_v38  ;;  %v1160_v38 = vld [vmem:[%s2657_s10] sm:$0xf] }
 0x1fd   : > { %v854_v45 = vadd.f32 %v853_v43, %v852_v39  ;;  %v867_v54 = vrot.slane %v866_v46, 1  ;;  %v1165_v42 = vperm.slane %v1160_v38, 3 }
 0x1fe   : > { %v848_v47 = vadd.f32 %v847_v44, %v846_v41  ;;  %v861_v56 = vrot.slane %v860_v48, 1  ;;  %v1164_v44 = vperm.slane %v1160_v38, 2 }
 0x1ff   : > { %969 = vmatmul.f32.vlgmr.msrb.gmra.mxu0 %v854_v45  ;;  %1009 = vmatmul.f32.vlgmr.msrb.gmra.mxu2 %v854_v45  ;;  %v868_v60 = vadd.f32 %v867_v54, %v866_v46 }
 0x200   : > { %949 = vmatmul.f32.vlgmr.msra.gmra.mxu3 %v848_v47  ;;  %989 = vmatmul.f32.vlgmr.msrb.gmra.mxu1 %v848_v47  ;;  %v862_v61 = vadd.f32 %v861_v56, %v860_v48  ;;  %v1256_v56 = vstv %s402_s12 }
 0x201   : > { %1182 = vmatpush.msra.mxu3 %v1156_v49  ;;  %1222 = vmatpush.msrb.mxu0 %v1158_v50 }
 0x202   : > { %1242 = vmatpush.msrb.mxu1 %v1159_v51 }
 0x203   : > { %1183 = vmatpush.msra.mxu3 %v1152_v52  ;;  %1223 = vmatpush.msrb.mxu0 %v1154_v53 }
 0x204   : > { %1243 = vmatpush.msrb.mxu1 %v1155_v55 }
 0x205   : > { %1184 = vmatpush.msra.mxu3 %v1148_v57  ;;  %1224 = vmatpush.msrb.mxu0 %v1150_v58 }
 0x206   : > { %1244 = vmatpush.msrb.mxu1 %v1151_v59 }
 0x207   : > { %1049 = vmatmul.f32.vlgmr.msra.gmra.mxu0 %v868_v60  ;;  %1089 = vmatmul.f32.vlgmr.msra.gmra.mxu2 %v868_v60 }
 0x208   : > { %1029 = vmatmul.f32.vlgmr.msrb.gmra.mxu3 %v862_v61  ;;  %1069 = vmatmul.f32.vlgmr.msra.gmra.mxu1 %v862_v61 }
 0x209   : > { %1185 = vmatpush.msra.mxu3 %v1144_v3  ;;  %1225 = vmatpush.msrb.mxu0 %v1146_v6  ;;  %v1260_v3 = vstv %s1259_s13  ;;  %v1162_v6 = vperm.slane %v1160_v38, 0 }
 0x20a   : > { %1245 = vmatpush.msrb.mxu1 %v1147_v9 }
 0x20b   : > { %1186 = vmatpush.msra.mxu3 %v1140_v12  ;;  %1226 = vmatpush.msrb.mxu0 %v1142_v15 }
 0x20c   : > { %1246 = vmatpush.msrb.mxu1 %v1143_v17 }
 0x20d   : > { %1187 = vmatpush.msra.mxu3 %v1136_v19  ;;  %1227 = vmatpush.msrb.mxu0 %v1138_v23 }
 0x20e   : > { %1247 = vmatpush.msrb.mxu1 %v1139_v25 }
 0x20f   : > { %1188 = vmatpush.msra.mxu3 %v1132_v62  ;;  %1228 = vmatpush.msrb.mxu0 %v1134_v26 }
 0x210   : > { %1248 = vmatpush.msrb.mxu1 %v1135_v63 }
 0x211   : > { %1189 = vmatpush.msra.mxu3 %v1128_v29  ;;  %1229 = vmatpush.msrb.mxu0 %v1130_v30  ;;  %v1163_v29 = vperm.slane %v1160_v38, 1 }
 0x212   : > { %1452 = vmatmul.msk.f32.vlgmr.msrb.gmra.mxu0 %vm1170_vm3, %v1127_v1  ;;  %1450 = vmatmul.msk.f32.vlgmr.msra.gmra.mxu3 %vm1170_vm3, %v1127_v1 }
 0x213   : > { %1202 = vmatpush.msrb.mxu3 %v1157_v0  ;;  %1249 = vmatpush.msrb.mxu1 %v1131_v2 }
 0x214   : > { %1453 = vmatmul.msk.f32.vlgmr.msrb.gmra.mxu1 %vm1170_vm3, %v1127_v1 }
 0x215   : > { %1203 = vmatpush.msrb.mxu3 %v1153_v4 }
 0x217   : > { %1204 = vmatpush.msrb.mxu3 %v1149_v5 }
 0x219   : > { %1205 = vmatpush.msrb.mxu3 %v1145_v7 }
 0x21b   : > { %1206 = vmatpush.msrb.mxu3 %v1141_v8 }
 0x21d   : > { %1207 = vmatpush.msrb.mxu3 %v1137_v10 }
 0x21f   : > { %1208 = vmatpush.msrb.mxu3 %v1133_v11 }
 0x221   : > { %1209 = vmatpush.msrb.mxu3 %v1129_v13 }
 0x222   : > { %1451 = vmatmul.msk.f32.vlgmr.msrb.gmra.mxu3 %vm1170_vm3, %v1127_v1 }
 0x27c   : > { %v970_v16 = vpop.f32.mrf.mxu0 }
 0x27d   : > { %v990_v14 = vpop.f32.mrf.mxu1 }
 0x282   : > { %v1010_v18 = vpop.f32.mrf.mxu2 }
 0x283   : > { %v950_v24 = vpop.f32.mrf.mxu3  ;;  %v1011_v27 = vadd.f32 %v1010_v18, %v990_v14 }
 0x284   : > { %v971_v28 = vadd.f32 %v970_v16, %v950_v24  ;;  %v1050_v31 = vpop.f32.mrf.mxu0 }
 0x285   : > { %v1070_v21 = vpop.f32.mrf.mxu1  ;;  %v1094_v33 = vmul.f32 %v1011_v27, %v1011_v27  ;;  %v1098_v12 = vperm.slane %v1011_v27, 0 }
 0x286   : > { %v1093_v36 = vmul.f32 %v971_v28, %v971_v28  ;;  %v1097_v17 = vperm.slane %v971_v28, 0 }
 0x287   : > { %v1100_v0 = vsub.f32 %v2518_v20, %v1098_v12 }
 0x288   : > { %v1099_v5 = vsub.f32 %v2520_v22, %v1097_v17 }
 0x28a   : > { %v1090_v32 = vpop.f32.mrf.mxu2 }
 0x28b   : > { %v1030_v34 = vpop.f32.mrf.mxu3  ;;  %v1091_v35 = vadd.f32 %v1090_v32, %v1070_v21 }
 0x28c   : > { %v1051_v37 = vadd.f32 %v1050_v31, %v1030_v34 }
 0x28d   : > { %v1096_v39 = vsub.f32 %v1091_v35, %v1094_v33 }
 0x28e   : > { %v1095_v40 = vsub.f32 %v1051_v37, %v1093_v36 }
 0x28f   : > { %v1102_v41 = vadd.f32 1e-05, %v1096_v39  ;;  %v1231_v45 = vpop.f32.mrf.mxu0 }
 0x290   : > { %v1101_v43 = vadd.f32 1e-05, %v1095_v40  ;;  %v1232_v48 = vadd.f32 %v1231_v45, %v1164_v44 }
 0x291   : > { %1470 = vrsqrt.f32 %v1102_v41  ;;  %v1251_v46 = vpop.f32.mrf.mxu1  ;;  %vm1119_vm6 = vweird.f32 %v1102_v41 }
 0x292   : > { %1472 = vrsqrt.f32 %v1101_v43  ;;  %v1252_v47 = vadd.f32 %v1251_v46, %v1165_v42  ;;  %v1254_v53 = vmax.f32 %v1232_v48, 0.0  ;;  %vm1109_vm7 = vweird.f32 %v1101_v43 }
 0x294   : > { %v1255_v50 = vmax.f32 %v1252_v47, 0.0  ;;  %v1257_v61 = vmul.f32 %v1256_v56, %v1254_v53 }
 0x295   : > { %v1191_v57 = vpop.f32.mrf.mxu3 }
 0x296   : > { %v1258_v59 = vmul.f32 %v1256_v56, %v1255_v50  ;;  %v1261_v62 = vadd.f32 %v1260_v3, %v1257_v61  ;;  %v1192_v26 = vadd.f32 %v1191_v57, %v1162_v6 }
 0x297   : > { %v1471_v49 = vpop.eup %1470 }
 0x298   : > { %v1473_v51 = vpop.eup %1472  ;;  %v1114_v52 = vmul.f32 %v1471_v49, %v1102_v41  ;;  %vm1120_vm4 = vweird.f32 %v1471_v49  ;;  %v1262_v23 = vadd.f32 %v1260_v3, %v1258_v59  ;;  %v1265_v7 = vperm.slane %v1261_v62, 0 }
 0x299   : > { %v1104_v54 = vmul.f32 %v1473_v51, %v1101_v43  ;;  %vm1110_vm5 = vweird.f32 %v1473_v51  ;;  %vm1121_vm8 = vmor %vm1119_vm6, %vm1120_vm4  ;;  %v1263_v10 = vmul.f32 %v1256_v56, %v1192_v26 }
 0x29a   : > { %v1115_v55 = vmul.f32 %v1471_v49, %v1114_v52  ;;  %vm1111_vm9 = vmor %vm1109_vm7, %vm1110_vm5  ;;  %v1266_v2 = vperm.slane %v1262_v23, 0 }
 0x29b   : > { %v1105_v58 = vmul.f32 %v1473_v51, %v1104_v54  ;;  %v1269_v28 = vperm.slane %v1263_v10, 0 }
 0x29c   : > { %v1116_v60 = vmul.f32 0.5, %v1115_v55 }
 0x29d   : > { %v1106_v9 = vmul.f32 0.5, %v1105_v58 }
 0x29e   : > { %v1117_v15 = vsub.f32 1.5, %v1116_v60 }
 0x29f   : > { %v1107_v19 = vsub.f32 1.5, %v1106_v9 }
 0x2a0   : > { %v1118_v25 = vmul.f32 %v1471_v49, %v1117_v15 }
 0x2a1   : > { %v1108_v63 = vmul.f32 %v1473_v51, %v1107_v19 }
 0x2a2   : > { %v1122_v30 = vsel %vm1121_vm8, %v1471_v49, %v1118_v25 }
 0x2a3   : > { %v1112_v1 = vsel %vm1111_vm9, %v1473_v51, %v1108_v63  ;;  %v1124_v4 = vperm.slane %v1122_v30, 0 }
 0x2a4   : > { %v1123_v8 = vperm.slane %v1112_v1, 0 }
 0x2a5   : > { %v1211_v11 = vpop.f32.mrf.mxu3  ;;  %v1126_v13 = vmul.f32 %v1124_v4, %v1100_v0 }
 0x2a6   : > { %v1212_v14 = vadd.f32 %v1211_v11, %v1163_v29  ;;  %v1125_v16 = vmul.f32 %v1123_v8, %v1099_v5 }
 0x2a7   : > { %v1268_v24 = vmul.f32 %v1266_v2, %v1126_v13 }
 0x2a8   : > { %v1264_v18 = vmul.f32 %v1256_v56, %v1212_v14  ;;  %v1267_v27 = vmul.f32 %v1265_v7, %v1125_v16 }
 0x2aa   : > { %v1270_v21 = vperm.slane %v1264_v18, 0  ;;  %v1271_v31 = vadd.f32 %v1269_v28, %v1267_v27 }
 0x2ac   : > { %v1272_v20 = vadd.f32 %v1270_v21, %v1268_v24  ;;  %vm1273_vm10 = vcmp.ge.f32.partialorder %v1271_v31, 0.0  ;;  %v1275_v32 = vmul.f32 0.01, %v1271_v31 }
 0x2ae   : > { %vm1274_vm11 = vcmp.ge.f32.partialorder %v1272_v20, 0.0  ;;  %v1276_v22 = vmul.f32 0.01, %v1272_v20  ;;  %v1277_v33 = vsel %vm1273_vm10, %v1271_v31, %v1275_v32 }
 0x2af   : > { %1279 = vst [vmem:[%s401_s17] sm:$0xff] %v1277_v33 }
 0x2b0   : > { %v1278_v34 = vsel %vm1274_vm11, %v1272_v20, %v1276_v22 }
 0x2b1   : > { %1280 = vst [vmem:[%s401_s17 + $0x8] sm:$0xff] %v1278_v34 }
 0x2b2 PF: > { %s22_s19 = sadd.s32 1, %s1480_s19  }
 0x2b3   : > { %p19_p4 = scmp.ge.s32.totalorder %s22_s19, 4  }
 0x2b5   :  { %21 = sbr.rel (!%p19_p4) target bundleno = 2 (0x2), region = 101 }

</bundles_post_ra>
